<compile_context>
chip_gen: v7x
topology: tpu7x:2x2x1
jax: 0.10.0
libtpu: 0.0.40
codegen_flags: <defaults>
</compile_context>

<pallas_src>
import math
from functools import partial

import jax
import jax.numpy as jnp
from jax.experimental import pallas as pl
from jax.experimental.pallas import tpu as pltpu

# ---------------- small, self-consistent "PinyConfig" ----------------
N_EMBD = 128
N_HEADS = 8
KV_HEADS = 2
HEAD_SIZE = N_EMBD // N_HEADS          # 16
GROUP = N_HEADS // KV_HEADS            # 4
FFN_DIM = 256
ROPE_BASE = 10000
EPS = 1e-6
NEG_INF = -1e9

Q_DIM = N_HEADS * HEAD_SIZE            # 128
KV_DIM = KV_HEADS * HEAD_SIZE          # 32
QKV_DIM = Q_DIM + 2 * KV_DIM           # 192
QKV_PAD = 256                          # pad to 2 full vreg lane-tiles (lane-dense QKV)


# ---------------- the single fused Pallas kernel (one batch element / grid step) ----------------
def _block_kernel(x_ref, g_attn_ref, g_mlp_ref, wqkv_ref, wo_ref, bo_ref,
                  w12_ref, w3_ref, cos_ref, sin_even_ref, sin_odd_ref,
                  o_ref, *, seq):
    f32 = jnp.float32
    bf16 = jnp.bfloat16

    x = x_ref[...]                                            # (T, C) f32 residual stream

    # ---- RMSNorm (attention branch), f32 ----
    ms = jnp.mean(x * x, axis=-1, keepdims=True)
    xn = x * jax.lax.rsqrt(ms + EPS) * g_attn_ref[...]

    # ---- fused Q|K|V projection: one (T, 256) lane-dense matmul (bf16 in, f32 acc) ----
    qkv = jnp.dot(xn.astype(bf16), wqkv_ref[...], preferred_element_type=f32)

    # ---- RoPE via XLU lane rolls + sign-folded sin tables:
    #        out[j] = x[j]*cos[j] + x[j+1]*sin_even[j] + x[j-1]*sin_odd[j]
    #      sin_even = -sin on even q|k lanes (0 elsewhere); sin_odd = +sin on odd lanes;
    #      cos = 1 / sins = 0 on v / padding lanes so they pass through untouched. ----
    left = pltpu.roll(qkv, shift=QKV_PAD - 1, axis=1)   # == shift -1: left[j]  = qkv[j+1]
    right = pltpu.roll(qkv, shift=1, axis=1)            #              right[j] = qkv[j-1]
    qkv = qkv * cos_ref[...] + left * sin_even_ref[...] + right * sin_odd_ref[...]

    scale = 1.0 / math.sqrt(HEAD_SIZE)
    q = qkv[:, :Q_DIM] * scale                           # (T, 128) f32 (scale folded in)
    k = qkv[:, Q_DIM:Q_DIM + KV_DIM]                     # (T, 32)  f32
    v = qkv[:, Q_DIM + KV_DIM:QKV_DIM]                   # (T, 32)  f32

    # ---- grouped-query attention (mask generated in-register, no HBM mask) ----
    rows = jax.lax.broadcasted_iota(jnp.int32, (seq, seq), 0)
    cols = jax.lax.broadcasted_iota(jnp.int32, (seq, seq), 1)
    causal = jnp.where(rows >= cols, 0.0, NEG_INF).astype(f32)
    mask_g = jnp.concatenate([causal] * GROUP, axis=0)   # (GROUP*T, T), shared by a group

    group_outs = []
    for g in range(KV_HEADS):                            # 2 static iterations
        k_g = k[:, g * HEAD_SIZE:(g + 1) * HEAD_SIZE].astype(bf16)   # (T, Dh)
        v_g = v[:, g * HEAD_SIZE:(g + 1) * HEAD_SIZE].astype(bf16)
        # Row-stack the group's GROUP query heads so scores / softmax / PV are one
        # batched op each (vectorized reductions, 2 matmuls per group instead of 8).
        q_stack = jnp.concatenate(
            [q[:, (g * GROUP + hh) * HEAD_SIZE:(g * GROUP + hh + 1) * HEAD_SIZE]
             for hh in range(GROUP)], axis=0)                        # (GROUP*T, Dh) f32
        s = jax.lax.dot_general(q_stack.astype(bf16), k_g,
                                (((1,), (1,)), ((), ())),
                                preferred_element_type=f32)          # (GROUP*T, T)
        s = s + mask_g
        s = s - jnp.max(s, axis=-1, keepdims=True)
        p = jnp.exp(s)
        p = p * pl.reciprocal(jnp.sum(p, axis=-1, keepdims=True), approx=True)
        y_stack = jnp.dot(p.astype(bf16), v_g, preferred_element_type=f32)  # (GROUP*T, Dh)
        # reassemble this group's heads lane-dense: (T, GROUP*Dh) = (T, 64)
        group_outs.append(jnp.concatenate(
            [y_stack[hh * seq:(hh + 1) * seq, :] for hh in range(GROUP)], axis=1))
    y2d = jnp.concatenate(group_outs, axis=1)             # (T, C) — lane-dense

    # ---- output projection (+bias) and first residual ----
    x = x + jnp.dot(y2d.astype(bf16), wo_ref[...],
                    preferred_element_type=f32) + bo_ref[...]

    # ---- RMSNorm (MLP branch) + fused SwiGLU MLP ----
    ms2 = jnp.mean(x * x, axis=-1, keepdims=True)
    xn2 = (x * jax.lax.rsqrt(ms2 + EPS) * g_mlp_ref[...]).astype(bf16)
    h12 = jnp.dot(xn2, w12_ref[...], preferred_element_type=f32)     # (T, 2*FFN) = (T, 512)
    h1 = h12[:, :FFN_DIM]                                            # w1(x)
    h2 = h12[:, FFN_DIM:]                                            # w2(x)
    gated = (h2 * jax.nn.sigmoid(h2)) * h1                           # silu(w2 x) * w1 x
    o_ref[...] = x + jnp.dot(gated.astype(bf16), w3_ref[...],
                             preferred_element_type=f32)


def block_forward(x, kp, cos_full, sin_even_full, sin_odd_full):
    """x: (B, T, C) f32.  kp: packed (fused/bf16) params.  One fused pallas_call,
    grid over batch (parallel -> both v7x TensorCores), weights resident across steps."""
    B, T, C = x.shape
    x2d = x.reshape(B * T, C)

    def full(shape):
        return pl.BlockSpec(shape, lambda b: (0, 0))      # whole array, VMEM-resident

    wbytes = 2 * (C * QKV_PAD + C * C + C * 2 * FFN_DIM + FFN_DIM * C)   # bf16 weights
    flops = (2 * B * T * (C * QKV_PAD + C * C + C * 2 * FFN_DIM + FFN_DIM * C)
             + 4 * B * N_HEADS * T * T * HEAD_SIZE)
    transcendentals = B * N_HEADS * T * T + B * T * FFN_DIM + 2 * B * T
    bytes_accessed = 2 * B * T * C * 4 + wbytes + 3 * T * QKV_PAD * 4 + 3 * C * 4

    out2d = pl.pallas_call(
        partial(_block_kernel, seq=T),
        out_shape=jax.ShapeDtypeStruct((B * T, C), jnp.float32),
        grid=(B,),
        in_specs=[
            pl.BlockSpec((T, C), lambda b: (b, 0)),        # x rows of this batch element
            full((1, C)), full((1, C)),                    # RMSNorm gains
            full((C, QKV_PAD)),                            # wq|wk|wv (lane padded)
            full((C, C)), full((1, C)),                    # wo, bo
            full((C, 2 * FFN_DIM)), full((FFN_DIM, C)),    # w1|w2, w3
            full((T, QKV_PAD)), full((T, QKV_PAD)), full((T, QKV_PAD)),  # RoPE tables
        ],
        out_specs=pl.BlockSpec((T, C), lambda b: (b, 0)),
        compiler_params=pltpu.CompilerParams(dimension_semantics=("parallel",)),
        cost_estimate=pl.CostEstimate(flops=flops, transcendentals=transcendentals,
                                      bytes_accessed=bytes_accessed),
    )(x2d, kp["g_attn"], kp["g_mlp"], kp["wqkv"], kp["wo"], kp["bo"],
      kp["w12"], kp["w3"], cos_full, sin_even_full, sin_odd_full)
    return out2d.reshape(B, T, C)


# ---------------- parameter / table packing for the fused kernel ----------------
def pack_params(p):
    pad = jnp.zeros((N_EMBD, QKV_PAD - QKV_DIM), jnp.float32)
    return dict(
        g_attn=p["g_attn"].reshape(1, -1),
        g_mlp=p["g_mlp"].reshape(1, -1),
        wqkv=jnp.concatenate([p["wq"], p["wk"], p["wv"], pad], axis=1).astype(jnp.bfloat16),
        wo=p["wo"].astype(jnp.bfloat16),
        bo=p["bo"].reshape(1, -1),
        w12=jnp.concatenate([p["w1"], p["w2"]], axis=1).astype(jnp.bfloat16),
        w3=p["w3"].astype(jnp.bfloat16),
    )


def make_rope_tables(T):
    """Returns ((cos,sin) (T,Dh) for the reference,
               (cos, sin_even, sin_odd) (T,256) sign-folded tables for the kernel)."""
    pos = jnp.arange(T, dtype=jnp.float32)
    freqs = 1.0 / (ROPE_BASE ** (jnp.arange(0, HEAD_SIZE, 2, dtype=jnp.float32) / HEAD_SIZE))
    ang = jnp.repeat(pos[:, None] * freqs[None, :], 2, axis=-1)          # (T, Dh)
    cos_t, sin_t = jnp.cos(ang), jnp.sin(ang)

    n_qk = (N_HEADS + KV_HEADS) * HEAD_SIZE                              # 160 q|k lanes
    n_fill = QKV_PAD - n_qk                                              # v + padding lanes
    even = (jnp.arange(n_qk) % 2 == 0)[None, :]
    qk_cos = jnp.tile(cos_t, (1, N_HEADS + KV_HEADS))                    # (T, 160)
    qk_sin = jnp.tile(sin_t, (1, N_HEADS + KV_HEADS))

    ones = jnp.ones((T, n_fill), jnp.float32)
    zeros = jnp.zeros((T, n_fill), jnp.float32)
    cos_full = jnp.concatenate([qk_cos, ones], axis=1)                   # v/pad lanes: cos=1
    sin_even_full = jnp.concatenate([jnp.where(even, -qk_sin, 0.0), zeros], axis=1)
    sin_odd_full = jnp.concatenate([jnp.where(even, 0.0, qk_sin), zeros], axis=1)
    return (cos_t, sin_t), (cos_full, sin_even_full, sin_odd_full)


# ---------------- pure-JAX reference (mirrors the torch module, f32 HIGHEST) ----------------
def apply_rope(x, cos, sin):
    x_even = x[..., 0::2]
    x_odd = x[..., 1::2]
    rotated = jnp.stack((-x_odd, x_even), axis=-1).reshape(x.shape)
    return x * cos + rotated * sin


def block_reference(x, p, cos, sin, mask):
    hp = jax.lax.Precision.HIGHEST

    def rms(z, g):
        return z * jax.lax.rsqrt(jnp.mean(z * z, -1, keepdims=True) + EPS) * g

    B, T, C = x.shape
    xn = rms(x, p["g_attn"])
    q = jnp.einsum("btc,cd->btd", xn, p["wq"], precision=hp)
    k = jnp.einsum("btc,cd->btd", xn, p["wk"], precision=hp)
    v = jnp.einsum("btc,cd->btd", xn, p["wv"], precision=hp)
    q = q.reshape(B, T, N_HEADS, HEAD_SIZE).transpose(0, 2, 1, 3)
    k = k.reshape(B, T, KV_HEADS, HEAD_SIZE).transpose(0, 2, 1, 3)
    v = v.reshape(B, T, KV_HEADS, HEAD_SIZE).transpose(0, 2, 1, 3)
    q = apply_rope(q, cos, sin)
    k = apply_rope(k, cos, sin)
    k = jnp.repeat(k, GROUP, axis=1)     # repeat_interleave(dim=1)
    v = jnp.repeat(v, GROUP, axis=1)
    s = jnp.einsum("bhqd,bhkd->bhqk", q, k, precision=hp) / math.sqrt(HEAD_SIZE) + mask
    a = jax.nn.softmax(s, axis=-1)
    y = jnp.einsum("bhqk,bhkd->bhqd", a, v, precision=hp)
    y = y.transpose(0, 2, 1, 3).reshape(B, T, C)
    y = jnp.einsum("btc,cd->btd", y, p["wo"], precision=hp) + p["bo"]
    x = x + y
    xn2 = rms(x, p["g_mlp"])
    h1 = jnp.einsum("btc,cf->btf", xn2, p["w1"], precision=hp)
    h2 = jnp.einsum("btc,cf->btf", xn2, p["w2"], precision=hp)
    m = jnp.einsum("btf,fc->btc", jax.nn.silu(h2) * h1, p["w3"], precision=hp)
    return x + m


# ---------------- parameter init (deterministic, in-script) ----------------
def make_params(key):
    ks = jax.random.split(key, 8)

    def w(k, shape):
        return 0.02 * jax.random.normal(k, shape, dtype=jnp.float32)

    return dict(
        g_attn=jnp.ones((N_EMBD,), jnp.float32),
        g_mlp=jnp.ones((N_EMBD,), jnp.float32),
        wq=w(ks[0], (N_EMBD, N_HEADS * HEAD_SIZE)),
        wk=w(ks[1], (N_EMBD, KV_HEADS * HEAD_SIZE)),
        wv=w(ks[2], (N_EMBD, KV_HEADS * HEAD_SIZE)),
        wo=w(ks[3], (N_EMBD, N_EMBD)),
        bo=w(ks[4], (N_EMBD,)),
        w1=w(ks[5], (N_EMBD, FFN_DIM)),
        w2=w(ks[6], (N_EMBD, FFN_DIM)),
        w3=w(ks[7], (FFN_DIM, N_EMBD)),
    )


if __name__ == "__main__":
    B, T = 2, 16

    root = jax.random.PRNGKey(0)
    k_x, k_p = jax.random.split(root)
    x = jax.random.normal(k_x, (B, T, N_EMBD), dtype=jnp.float32)
    params = make_params(k_p)
    kparams = pack_params(params)

    (cos_t, sin_t), (cos_full, sin_even_full, sin_odd_full) = make_rope_tables(T)

    # additive causal mask for the reference (kernel builds its own via iota)
    causal = jnp.tril(jnp.ones((T, T), dtype=jnp.float32))
    mask = jnp.where(causal == 1.0, 0.0, NEG_INF).astype(jnp.float32)

    out = jax.jit(block_forward)(x, kparams, cos_full, sin_even_full, sin_odd_full)
    out = jax.block_until_ready(out)

    ref = block_reference(x, params, cos_t, sin_t, mask)
    err = float(jnp.max(jnp.abs(out - ref)))
    # bf16 MXU operands with f32 accumulation -> small deviation from the f32 reference.
    assert out.shape == (B, T, N_EMBD) and err < 2e-2, f"mismatch: max abs err {err}"

    print("KERNEL_OK")
</pallas_src>

<mosaic_0001>
module attributes {stable_mosaic.version = 11 : i64} {
  func.func @_block_kernel(%arg0: i32, %arg1: memref<16x128xf32, #tpu.memory_space<vmem>>, %arg2: memref<1x128xf32, #tpu.memory_space<vmem>>, %arg3: memref<1x128xf32, #tpu.memory_space<vmem>>, %arg4: memref<128x256xbf16, #tpu.memory_space<vmem>>, %arg5: memref<128x128xbf16, #tpu.memory_space<vmem>>, %arg6: memref<1x128xf32, #tpu.memory_space<vmem>>, %arg7: memref<128x512xbf16, #tpu.memory_space<vmem>>, %arg8: memref<256x128xbf16, #tpu.memory_space<vmem>>, %arg9: memref<16x256xf32, #tpu.memory_space<vmem>>, %arg10: memref<16x256xf32, #tpu.memory_space<vmem>>, %arg11: memref<16x256xf32, #tpu.memory_space<vmem>>, %arg12: memref<16x128xf32, #tpu.memory_space<vmem>>) attributes {dimension_semantics = [#tpu.dimension_semantics<parallel>], iteration_bounds = array<i64: 2>, scalar_prefetch = 0 : i64, scratch_operands = 0 : i64, tpu.core_type = #tpu.core_type<tc>, window_params = [{transform_indices = @transform_0, window_bounds = array<i64: 16, 128>}, {pipeline_mode = #tpu.pipeline_mode<synchronous>, transform_indices = @transform_1, window_bounds = array<i64: 1, 128>}, {pipeline_mode = #tpu.pipeline_mode<synchronous>, transform_indices = @transform_2, window_bounds = array<i64: 1, 128>}, {pipeline_mode = #tpu.pipeline_mode<synchronous>, transform_indices = @transform_3, window_bounds = array<i64: 128, 256>}, {pipeline_mode = #tpu.pipeline_mode<synchronous>, transform_indices = @transform_4, window_bounds = array<i64: 128, 128>}, {pipeline_mode = #tpu.pipeline_mode<synchronous>, transform_indices = @transform_5, window_bounds = array<i64: 1, 128>}, {pipeline_mode = #tpu.pipeline_mode<synchronous>, transform_indices = @transform_6, window_bounds = array<i64: 128, 512>}, {pipeline_mode = #tpu.pipeline_mode<synchronous>, transform_indices = @transform_7, window_bounds = array<i64: 256, 128>}, {pipeline_mode = #tpu.pipeline_mode<synchronous>, transform_indices = @transform_8, window_bounds = array<i64: 16, 256>}, {pipeline_mode = #tpu.pipeline_mode<synchronous>, transform_indices = @transform_9, window_bounds = array<i64: 16, 256>}, {pipeline_mode = #tpu.pipeline_mode<synchronous>, transform_indices = @transform_10, window_bounds = array<i64: 16, 256>}, {transform_indices = @transform_11, window_bounds = array<i64: 16, 128>}]} {
    %c0 = arith.constant 0 : index
    %c0_0 = arith.constant 0 : index
    %0 = vector.load %arg1[%c0, %c0_0] : memref<16x128xf32, #tpu.memory_space<vmem>>, vector<16x128xf32>
    %1 = arith.mulf %0, %0 : vector<16x128xf32>
    %cst = arith.constant dense<0.000000e+00> : vector<16xf32>
    %2 = vector.multi_reduction <add>, %1, %cst [1] : vector<16x128xf32> to vector<16xf32>
    %3 = vector.shape_cast %2 : vector<16xf32> to vector<16x1xf32>
    %cst_1 = arith.constant 1.280000e+02 : f32
    %4 = vector.broadcast %cst_1 : f32 to vector<16x1xf32>
    %5 = arith.divf %3, %4 : vector<16x1xf32>
    %cst_2 = arith.constant 9.99999997E-7 : f32
    %6 = vector.broadcast %cst_2 : f32 to vector<16x1xf32>
    %7 = arith.addf %5, %6 : vector<16x1xf32>
    %8 = math.rsqrt %7 : vector<16x1xf32>
    %9 = vector.broadcast %8 : vector<16x1xf32> to vector<16x128xf32>
    %10 = arith.mulf %0, %9 : vector<16x128xf32>
    %c0_3 = arith.constant 0 : index
    %c0_4 = arith.constant 0 : index
    %11 = vector.load %arg2[%c0_3, %c0_4] : memref<1x128xf32, #tpu.memory_space<vmem>>, vector<1x128xf32>
    %12 = vector.broadcast %11 : vector<1x128xf32> to vector<16x128xf32>
    %13 = arith.mulf %10, %12 : vector<16x128xf32>
    %14 = arith.truncf %13 : vector<16x128xf32> to vector<16x128xbf16>
    %c0_5 = arith.constant 0 : index
    %c0_6 = arith.constant 0 : index
    %15 = vector.load %arg4[%c0_5, %c0_6] : memref<128x256xbf16, #tpu.memory_space<vmem>>, vector<128x256xbf16>
    %cst_7 = arith.constant dense<0.000000e+00> : vector<16x256xf32>
    %16 = tpu.matmul %14, %15, %cst_7 {dimension_numbers = #tpu.dot_dimension_numbers<[1], [0], [0], [1], [0, 0, 1, 1], [], []>} : vector<16x128xbf16>, vector<128x256xbf16>, vector<16x256xf32> -> vector<16x256xf32>
    %c255_i32 = arith.constant 255 : i32
    %17 = tpu.dynamic_rotate %16 by %c255_i32 dim 1 : vector<16x256xf32>, i32 -> vector<16x256xf32>
    %c1_i32 = arith.constant 1 : i32
    %18 = tpu.dynamic_rotate %16 by %c1_i32 dim 1 : vector<16x256xf32>, i32 -> vector<16x256xf32>
    %c0_8 = arith.constant 0 : index
    %c0_9 = arith.constant 0 : index
    %19 = vector.load %arg9[%c0_8, %c0_9] : memref<16x256xf32, #tpu.memory_space<vmem>>, vector<16x256xf32>
    %20 = arith.mulf %16, %19 : vector<16x256xf32>
    %c0_10 = arith.constant 0 : index
    %c0_11 = arith.constant 0 : index
    %21 = vector.load %arg10[%c0_10, %c0_11] : memref<16x256xf32, #tpu.memory_space<vmem>>, vector<16x256xf32>
    %22 = arith.mulf %17, %21 : vector<16x256xf32>
    %23 = arith.addf %20, %22 : vector<16x256xf32>
    %c0_12 = arith.constant 0 : index
    %c0_13 = arith.constant 0 : index
    %24 = vector.load %arg11[%c0_12, %c0_13] : memref<16x256xf32, #tpu.memory_space<vmem>>, vector<16x256xf32>
    %25 = arith.mulf %18, %24 : vector<16x256xf32>
    %26 = arith.addf %23, %25 : vector<16x256xf32>
    %27 = vector.extract_strided_slice %26 {offsets = [0, 0], sizes = [16, 128], strides = [1, 1]} : vector<16x256xf32> to vector<16x128xf32>
    %cst_14 = arith.constant 2.500000e-01 : f32
    %28 = vector.broadcast %cst_14 : f32 to vector<16x128xf32>
    %29 = arith.mulf %27, %28 : vector<16x128xf32>
    %30 = vector.extract_strided_slice %26 {offsets = [0, 128], sizes = [16, 32], strides = [1, 1]} : vector<16x256xf32> to vector<16x32xf32>
    %31 = vector.extract_strided_slice %26 {offsets = [0, 160], sizes = [16, 32], strides = [1, 1]} : vector<16x256xf32> to vector<16x32xf32>
    %32 = tpu.iota {dimensions = array<i32: 0>} : vector<16x16xi32>
    %33 = tpu.iota {dimensions = array<i32: 1>} : vector<16x16xi32>
    %34 = arith.cmpi sge, %32, %33 : vector<16x16xi32>
    %cst_15 = arith.constant 0.000000e+00 : f32
    %cst_16 = arith.constant -1.000000e+09 : f32
    %35 = vector.broadcast %cst_15 : f32 to vector<16x16xf32>
    %36 = vector.broadcast %cst_16 : f32 to vector<16x16xf32>
    %37 = arith.select %34, %35, %36 : vector<16x16xi1>, vector<16x16xf32>
    %38 = tpu.concatenate %37, %37, %37, %37 in 0 : vector<16x16xf32>, vector<16x16xf32>, vector<16x16xf32>, vector<16x16xf32> -> vector<64x16xf32>
    %39 = vector.extract_strided_slice %30 {offsets = [0, 0], sizes = [16, 16], strides = [1, 1]} : vector<16x32xf32> to vector<16x16xf32>
    %40 = arith.truncf %39 : vector<16x16xf32> to vector<16x16xbf16>
    %41 = vector.extract_strided_slice %31 {offsets = [0, 0], sizes = [16, 16], strides = [1, 1]} : vector<16x32xf32> to vector<16x16xf32>
    %42 = arith.truncf %41 : vector<16x16xf32> to vector<16x16xbf16>
    %43 = vector.extract_strided_slice %29 {offsets = [0, 0], sizes = [16, 16], strides = [1, 1]} : vector<16x128xf32> to vector<16x16xf32>
    %44 = vector.extract_strided_slice %29 {offsets = [0, 16], sizes = [16, 16], strides = [1, 1]} : vector<16x128xf32> to vector<16x16xf32>
    %45 = vector.extract_strided_slice %29 {offsets = [0, 32], sizes = [16, 16], strides = [1, 1]} : vector<16x128xf32> to vector<16x16xf32>
    %46 = vector.extract_strided_slice %29 {offsets = [0, 48], sizes = [16, 16], strides = [1, 1]} : vector<16x128xf32> to vector<16x16xf32>
    %47 = tpu.concatenate %43, %44, %45, %46 in 0 : vector<16x16xf32>, vector<16x16xf32>, vector<16x16xf32>, vector<16x16xf32> -> vector<64x16xf32>
    %48 = arith.truncf %47 : vector<64x16xf32> to vector<64x16xbf16>
    %cst_17 = arith.constant dense<0.000000e+00> : vector<64x16xf32>
    %49 = tpu.matmul %48, %40, %cst_17 {dimension_numbers = #tpu.dot_dimension_numbers<[1], [1], [0], [0], [0, 0, 1, 0], [], []>} : vector<64x16xbf16>, vector<16x16xbf16>, vector<64x16xf32> -> vector<64x16xf32>
    %50 = arith.addf %49, %38 : vector<64x16xf32>
    %cst_18 = arith.constant dense<0xFF800000> : vector<64xf32>
    %51 = vector.multi_reduction <maximumf>, %50, %cst_18 [1] : vector<64x16xf32> to vector<64xf32>
    %52 = vector.shape_cast %51 : vector<64xf32> to vector<64x1xf32>
    %53 = vector.broadcast %52 : vector<64x1xf32> to vector<64x16xf32>
    %54 = arith.subf %50, %53 : vector<64x16xf32>
    %55 = math.exp %54 : vector<64x16xf32>
    %cst_19 = arith.constant dense<0.000000e+00> : vector<64xf32>
    %56 = vector.multi_reduction <add>, %55, %cst_19 [1] : vector<64x16xf32> to vector<64xf32>
    %57 = vector.shape_cast %56 : vector<64xf32> to vector<64x1xf32>
    %58 = tpu.reciprocal %57 {approx = true} : vector<64x1xf32> -> vector<64x1xf32>
    %59 = vector.broadcast %58 : vector<64x1xf32> to vector<64x16xf32>
    %60 = arith.mulf %55, %59 : vector<64x16xf32>
    %61 = arith.truncf %60 : vector<64x16xf32> to vector<64x16xbf16>
    %cst_20 = arith.constant dense<0.000000e+00> : vector<64x16xf32>
    %62 = tpu.matmul %61, %42, %cst_20 {dimension_numbers = #tpu.dot_dimension_numbers<[1], [0], [0], [1], [0, 0, 1, 1], [], []>} : vector<64x16xbf16>, vector<16x16xbf16>, vector<64x16xf32> -> vector<64x16xf32>
    %63 = vector.extract_strided_slice %62 {offsets = [0, 0], sizes = [16, 16], strides = [1, 1]} : vector<64x16xf32> to vector<16x16xf32>
    %64 = vector.extract_strided_slice %62 {offsets = [16, 0], sizes = [16, 16], strides = [1, 1]} : vector<64x16xf32> to vector<16x16xf32>
    %65 = vector.extract_strided_slice %62 {offsets = [32, 0], sizes = [16, 16], strides = [1, 1]} : vector<64x16xf32> to vector<16x16xf32>
    %66 = vector.extract_strided_slice %62 {offsets = [48, 0], sizes = [16, 16], strides = [1, 1]} : vector<64x16xf32> to vector<16x16xf32>
    %67 = tpu.concatenate %63, %64, %65, %66 in 1 : vector<16x16xf32>, vector<16x16xf32>, vector<16x16xf32>, vector<16x16xf32> -> vector<16x64xf32>
    %68 = vector.extract_strided_slice %30 {offsets = [0, 16], sizes = [16, 16], strides = [1, 1]} : vector<16x32xf32> to vector<16x16xf32>
    %69 = arith.truncf %68 : vector<16x16xf32> to vector<16x16xbf16>
    %70 = vector.extract_strided_slice %31 {offsets = [0, 16], sizes = [16, 16], strides = [1, 1]} : vector<16x32xf32> to vector<16x16xf32>
    %71 = arith.truncf %70 : vector<16x16xf32> to vector<16x16xbf16>
    %72 = vector.extract_strided_slice %29 {offsets = [0, 64], sizes = [16, 16], strides = [1, 1]} : vector<16x128xf32> to vector<16x16xf32>
    %73 = vector.extract_strided_slice %29 {offsets = [0, 80], sizes = [16, 16], strides = [1, 1]} : vector<16x128xf32> to vector<16x16xf32>
    %74 = vector.extract_strided_slice %29 {offsets = [0, 96], sizes = [16, 16], strides = [1, 1]} : vector<16x128xf32> to vector<16x16xf32>
    %75 = vector.extract_strided_slice %29 {offsets = [0, 112], sizes = [16, 16], strides = [1, 1]} : vector<16x128xf32> to vector<16x16xf32>
    %76 = tpu.concatenate %72, %73, %74, %75 in 0 : vector<16x16xf32>, vector<16x16xf32>, vector<16x16xf32>, vector<16x16xf32> -> vector<64x16xf32>
    %77 = arith.truncf %76 : vector<64x16xf32> to vector<64x16xbf16>
    %cst_21 = arith.constant dense<0.000000e+00> : vector<64x16xf32>
    %78 = tpu.matmul %77, %69, %cst_21 {dimension_numbers = #tpu.dot_dimension_numbers<[1], [1], [0], [0], [0, 0, 1, 0], [], []>} : vector<64x16xbf16>, vector<16x16xbf16>, vector<64x16xf32> -> vector<64x16xf32>
    %79 = arith.addf %78, %38 : vector<64x16xf32>
    %cst_22 = arith.constant dense<0xFF800000> : vector<64xf32>
    %80 = vector.multi_reduction <maximumf>, %79, %cst_22 [1] : vector<64x16xf32> to vector<64xf32>
    %81 = vector.shape_cast %80 : vector<64xf32> to vector<64x1xf32>
    %82 = vector.broadcast %81 : vector<64x1xf32> to vector<64x16xf32>
    %83 = arith.subf %79, %82 : vector<64x16xf32>
    %84 = math.exp %83 : vector<64x16xf32>
    %cst_23 = arith.constant dense<0.000000e+00> : vector<64xf32>
    %85 = vector.multi_reduction <add>, %84, %cst_23 [1] : vector<64x16xf32> to vector<64xf32>
    %86 = vector.shape_cast %85 : vector<64xf32> to vector<64x1xf32>
    %87 = tpu.reciprocal %86 {approx = true} : vector<64x1xf32> -> vector<64x1xf32>
    %88 = vector.broadcast %87 : vector<64x1xf32> to vector<64x16xf32>
    %89 = arith.mulf %84, %88 : vector<64x16xf32>
    %90 = arith.truncf %89 : vector<64x16xf32> to vector<64x16xbf16>
    %cst_24 = arith.constant dense<0.000000e+00> : vector<64x16xf32>
    %91 = tpu.matmul %90, %71, %cst_24 {dimension_numbers = #tpu.dot_dimension_numbers<[1], [0], [0], [1], [0, 0, 1, 1], [], []>} : vector<64x16xbf16>, vector<16x16xbf16>, vector<64x16xf32> -> vector<64x16xf32>
    %92 = vector.extract_strided_slice %91 {offsets = [0, 0], sizes = [16, 16], strides = [1, 1]} : vector<64x16xf32> to vector<16x16xf32>
    %93 = vector.extract_strided_slice %91 {offsets = [16, 0], sizes = [16, 16], strides = [1, 1]} : vector<64x16xf32> to vector<16x16xf32>
    %94 = vector.extract_strided_slice %91 {offsets = [32, 0], sizes = [16, 16], strides = [1, 1]} : vector<64x16xf32> to vector<16x16xf32>
    %95 = vector.extract_strided_slice %91 {offsets = [48, 0], sizes = [16, 16], strides = [1, 1]} : vector<64x16xf32> to vector<16x16xf32>
    %96 = tpu.concatenate %92, %93, %94, %95 in 1 : vector<16x16xf32>, vector<16x16xf32>, vector<16x16xf32>, vector<16x16xf32> -> vector<16x64xf32>
    %97 = tpu.concatenate %67, %96 in 1 : vector<16x64xf32>, vector<16x64xf32> -> vector<16x128xf32>
    %98 = arith.truncf %97 : vector<16x128xf32> to vector<16x128xbf16>
    %c0_25 = arith.constant 0 : index
    %c0_26 = arith.constant 0 : index
    %99 = vector.load %arg5[%c0_25, %c0_26] : memref<128x128xbf16, #tpu.memory_space<vmem>>, vector<128x128xbf16>
    %cst_27 = arith.constant dense<0.000000e+00> : vector<16x128xf32>
    %100 = tpu.matmul %98, %99, %cst_27 {dimension_numbers = #tpu.dot_dimension_numbers<[1], [0], [0], [1], [0, 0, 1, 1], [], []>} : vector<16x128xbf16>, vector<128x128xbf16>, vector<16x128xf32> -> vector<16x128xf32>
    %101 = arith.addf %0, %100 : vector<16x128xf32>
    %c0_28 = arith.constant 0 : index
    %c0_29 = arith.constant 0 : index
    %102 = vector.load %arg6[%c0_28, %c0_29] : memref<1x128xf32, #tpu.memory_space<vmem>>, vector<1x128xf32>
    %103 = vector.broadcast %102 : vector<1x128xf32> to vector<16x128xf32>
    %104 = arith.addf %101, %103 : vector<16x128xf32>
    %105 = arith.mulf %104, %104 : vector<16x128xf32>
    %cst_30 = arith.constant dense<0.000000e+00> : vector<16xf32>
    %106 = vector.multi_reduction <add>, %105, %cst_30 [1] : vector<16x128xf32> to vector<16xf32>
    %107 = vector.shape_cast %106 : vector<16xf32> to vector<16x1xf32>
    %cst_31 = arith.constant 1.280000e+02 : f32
    %108 = vector.broadcast %cst_31 : f32 to vector<16x1xf32>
    %109 = arith.divf %107, %108 : vector<16x1xf32>
    %cst_32 = arith.constant 9.99999997E-7 : f32
    %110 = vector.broadcast %cst_32 : f32 to vector<16x1xf32>
    %111 = arith.addf %109, %110 : vector<16x1xf32>
    %112 = math.rsqrt %111 : vector<16x1xf32>
    %113 = vector.broadcast %112 : vector<16x1xf32> to vector<16x128xf32>
    %114 = arith.mulf %104, %113 : vector<16x128xf32>
    %c0_33 = arith.constant 0 : index
    %c0_34 = arith.constant 0 : index
    %115 = vector.load %arg3[%c0_33, %c0_34] : memref<1x128xf32, #tpu.memory_space<vmem>>, vector<1x128xf32>
    %116 = vector.broadcast %115 : vector<1x128xf32> to vector<16x128xf32>
    %117 = arith.mulf %114, %116 : vector<16x128xf32>
    %118 = arith.truncf %117 : vector<16x128xf32> to vector<16x128xbf16>
    %c0_35 = arith.constant 0 : index
    %c0_36 = arith.constant 0 : index
    %119 = vector.load %arg7[%c0_35, %c0_36] : memref<128x512xbf16, #tpu.memory_space<vmem>>, vector<128x512xbf16>
    %cst_37 = arith.constant dense<0.000000e+00> : vector<16x512xf32>
    %120 = tpu.matmul %118, %119, %cst_37 {dimension_numbers = #tpu.dot_dimension_numbers<[1], [0], [0], [1], [0, 0, 1, 1], [], []>} : vector<16x128xbf16>, vector<128x512xbf16>, vector<16x512xf32> -> vector<16x512xf32>
    %121 = vector.extract_strided_slice %120 {offsets = [0, 0], sizes = [16, 256], strides = [1, 1]} : vector<16x512xf32> to vector<16x256xf32>
    %122 = vector.extract_strided_slice %120 {offsets = [0, 256], sizes = [16, 256], strides = [1, 1]} : vector<16x512xf32> to vector<16x256xf32>
    %123 = arith.negf %122 : vector<16x256xf32>
    %124 = math.exp %123 : vector<16x256xf32>
    %cst_38 = arith.constant 1.000000e+00 : f32
    %125 = vector.broadcast %cst_38 : f32 to vector<16x256xf32>
    %126 = arith.addf %125, %124 : vector<16x256xf32>
    %127 = arith.divf %125, %126 : vector<16x256xf32>
    %128 = arith.mulf %122, %127 : vector<16x256xf32>
    %129 = arith.mulf %128, %121 : vector<16x256xf32>
    %130 = arith.truncf %129 : vector<16x256xf32> to vector<16x256xbf16>
    %c0_39 = arith.constant 0 : index
    %c0_40 = arith.constant 0 : index
    %131 = vector.load %arg8[%c0_39, %c0_40] : memref<256x128xbf16, #tpu.memory_space<vmem>>, vector<256x128xbf16>
    %cst_41 = arith.constant dense<0.000000e+00> : vector<16x128xf32>
    %132 = tpu.matmul %130, %131, %cst_41 {dimension_numbers = #tpu.dot_dimension_numbers<[1], [0], [0], [1], [0, 0, 1, 1], [], []>} : vector<16x256xbf16>, vector<256x128xbf16>, vector<16x128xf32> -> vector<16x128xf32>
    %133 = arith.addf %104, %132 : vector<16x128xf32>
    %c0_42 = arith.constant 0 : index
    %c0_43 = arith.constant 0 : index
    %134 = vector.load %arg12[%c0_42, %c0_43] : memref<16x128xf32, #tpu.memory_space<vmem>>, vector<16x128xf32>
    tpu.vector_store %arg12[%c0_42, %c0_43], %133 {strides = array<i32>} : memref<16x128xf32, #tpu.memory_space<vmem>>, vector<16x128xf32>,
    return
  }
  func.func @transform_0(%arg0: i32) -> (i32, i32) {
    %c0_i32 = arith.constant 0 : i32
    %c0_i32_0 = arith.constant 0 : i32
    return %arg0, %c0_i32 : i32, i32
  }
  func.func @transform_1(%arg0: i32) -> (i32, i32) {
    %c0_i32 = arith.constant 0 : i32
    %c0_i32_0 = arith.constant 0 : i32
    %c0_i32_1 = arith.constant 0 : i32
    return %c0_i32, %c0_i32_0 : i32, i32
  }
  func.func @transform_2(%arg0: i32) -> (i32, i32) {
    %c0_i32 = arith.constant 0 : i32
    %c0_i32_0 = arith.constant 0 : i32
    %c0_i32_1 = arith.constant 0 : i32
    return %c0_i32, %c0_i32_0 : i32, i32
  }
  func.func @transform_3(%arg0: i32) -> (i32, i32) {
    %c0_i32 = arith.constant 0 : i32
    %c0_i32_0 = arith.constant 0 : i32
    %c0_i32_1 = arith.constant 0 : i32
    return %c0_i32, %c0_i32_0 : i32, i32
  }
  func.func @transform_4(%arg0: i32) -> (i32, i32) {
    %c0_i32 = arith.constant 0 : i32
    %c0_i32_0 = arith.constant 0 : i32
    %c0_i32_1 = arith.constant 0 : i32
    return %c0_i32, %c0_i32_0 : i32, i32
  }
  func.func @transform_5(%arg0: i32) -> (i32, i32) {
    %c0_i32 = arith.constant 0 : i32
    %c0_i32_0 = arith.constant 0 : i32
    %c0_i32_1 = arith.constant 0 : i32
    return %c0_i32, %c0_i32_0 : i32, i32
  }
  func.func @transform_6(%arg0: i32) -> (i32, i32) {
    %c0_i32 = arith.constant 0 : i32
    %c0_i32_0 = arith.constant 0 : i32
    %c0_i32_1 = arith.constant 0 : i32
    return %c0_i32, %c0_i32_0 : i32, i32
  }
  func.func @transform_7(%arg0: i32) -> (i32, i32) {
    %c0_i32 = arith.constant 0 : i32
    %c0_i32_0 = arith.constant 0 : i32
    %c0_i32_1 = arith.constant 0 : i32
    return %c0_i32, %c0_i32_0 : i32, i32
  }
  func.func @transform_8(%arg0: i32) -> (i32, i32) {
    %c0_i32 = arith.constant 0 : i32
    %c0_i32_0 = arith.constant 0 : i32
    %c0_i32_1 = arith.constant 0 : i32
    return %c0_i32, %c0_i32_0 : i32, i32
  }
  func.func @transform_9(%arg0: i32) -> (i32, i32) {
    %c0_i32 = arith.constant 0 : i32
    %c0_i32_0 = arith.constant 0 : i32
    %c0_i32_1 = arith.constant 0 : i32
    return %c0_i32, %c0_i32_0 : i32, i32
  }
  func.func @transform_10(%arg0: i32) -> (i32, i32) {
    %c0_i32 = arith.constant 0 : i32
    %c0_i32_0 = arith.constant 0 : i32
    %c0_i32_1 = arith.constant 0 : i32
    return %c0_i32, %c0_i32_0 : i32, i32
  }
  func.func @transform_11(%arg0: i32) -> (i32, i32) {
    %c0_i32 = arith.constant 0 : i32
    %c0_i32_0 = arith.constant 0 : i32
    return %arg0, %c0_i32 : i32, i32
  }
}

</mosaic_0001>

<bundles_post_ra>
// kernel: block_forward.1
= control target key start
LH: loop header
LB: loop body
LE: loop exit
PB: predicated region body
PF: predicated region fallthrough
CT: control target
= control target key end

     0   :  { %s3787_s0 = inlined_call_operand.hbm [shape: f32[32,128], index: 0, kind: input, shape index: {}]   ;;  %s3788_s1 = inlined_call_operand.vmem [shape: f32[1,128], index: 1, kind: input, shape index: {}]   ;;  %s3789_s2 = inlined_call_operand.vmem [shape: f32[1,128], index: 2, kind: input, shape index: {}]   ;;  %s3790_s3 = inlined_call_operand.hbm [shape: bf16[128,256], index: 3, kind: input, shape index: {}]   ;;  %s3791_s4 = inlined_call_operand.hbm [shape: bf16[128,128], index: 4, kind: input, shape index: {}]   ;;  %s3792_s5 = inlined_call_operand.hbm [shape: f32[1,128], index: 5, kind: input, shape index: {}]   ;;  %s3793_s6 = inlined_call_operand.hbm [shape: bf16[128,512], index: 6, kind: input, shape index: {}]   ;;  %s3794_s7 = inlined_call_operand.hbm [shape: bf16[256,128], index: 7, kind: input, shape index: {}]   ;;  %s3795_s8 = inlined_call_operand.vmem [shape: f32[16,256], index: 8, kind: input, shape index: {}]   ;;  %s3796_s9 = inlined_call_operand.hbm [shape: f32[16,256], index: 9, kind: input, shape index: {}]   ;;  %s3797_s10 = inlined_call_operand.hbm [shape: f32[16,256], index: 10, kind: input, shape index: {}]   ;;  %s3798_s11 = inlined_call_operand.hbm [shape: f32[32,128], index: 11, kind: output, shape index: {}]  }
   0x1   :  { %3806 = sst [smem:[#allocation23_spill]] %s3789_s2 }
   0x2   :  { %3807 = sst [smem:[#allocation24_spill]] %s3790_s3 }
   0x3   :  { %3808 = sst [smem:[#allocation25_spill]] %s3792_s5 }
   0x4   :  { %3809 = sst [smem:[#allocation26_spill]] %s3795_s8 }
   0x5   :  { %3810 = sst [smem:[#allocation27_spill]] %s3798_s11 }
   0x6   :  { %16 = vsyncpa [#allocation3], 0 }
   0x7   :  { %18 = vsyncpa [#allocation3 + $0x1], 0 }
   0x8   :  { %19 = vsyncpa [#allocation6], 0 }
   0x9   :  { %20 = vsyncpa [#allocation9], 0 }
   0xa   :  { %21 = vsyncpa [#allocation12], 0 }
   0xb   :  { %22 = vsyncpa [#allocation15], 0 }
   0xc   :  { %23 = vsyncpa [#allocation4], 0 }
   0xd   :  { %25 = vsyncpa [#allocation4 + $0x1], 0  ;;  %s3153_s17 = smov 0   ;;  %s3155_s18 = smov 0  }
   0xe   :  { %s3157_s19 = smov 0   ;;  %s3159_s20 = smov 0  }
   0xf LB: > { %s3063_s21 = smov [#allocation5]   ;;  %s3174_s23 = sadd.s32 4294967295, %s3061_s20   ;;  %s3061_s20 = sphi %s3159_s20, %s3841_s20   ;;  %s3057_s19 = sphi %s3157_s19, %s3840_s19   ;;  %s3053_s18 = sphi %s3155_s18, %s3839_s18   ;;  %s3049_s17 = sphi %s3153_s17, %s3838_s17  }
  0x10   : > { %s316_s22 = sshll.u32 %s3063_s21, 4  ;;  %p2142_p0 = scmp.ge.s32.totalorder %s3061_s20, 1  ;;  %s3179_s22 = int_to_ptr.vmem [resolvable:$true] %s316_s22 }
  0x11   : > { %p3801_p1 = scmp.eq.s32.totalorder %s3174_s23, 0  ;;  %p298_p2 = scmp.lt.s32.totalorder %s3061_s20, 3 }
  0x12   : > { %s3064_s25 = smov [#allocation8]   ;;  %s3065_s28 = smov [#allocation11]  }
  0x13   : > { %p3181_p3 = pnand %p2142_p0, %p298_p2  ;;  %s343_s26 = sshll.u32 %s3064_s25, 4  ;;  %s3194_s26 = int_to_ptr.vmem [resolvable:$true] %s343_s26 }
  0x14   : > { %s3196_s29 = sshll.u32 %s3065_s28, 4  ;;  %s3813_s3 = sld [smem:[#allocation24_spill]]  ;;  %s367_s29 = int_to_ptr.vmem [resolvable:$true] %s3196_s29 }
  0x15   : > { %s3811_s24 = scalar_select %p3181_p3, 1, 0 }
  0x16   : > { %p2411_p5 = pneg %p3181_p3 }
  0x18   : > { %p3190_p6 = pnand %p2411_p5, %p3801_p1 }
  0x1a   : > { %s2753_s13 = scalar_lea.hbm %s3813_s3, 2048  ;;  %p3206_p8 = pneg %p3190_p6 }
  0x1b   : > { %p2754_p7 = scmp.ne.s32.totalorder %s3813_s3, %s2753_s13  ;;  %p2760_p11 = scmp.lt.u32.totalorder %s2753_s13, %s3813_s3 }
  0x1d   : > { %p2756_p9 = pnand %p3206_p8, %p2754_p7 }
  0x1f   : > { %p2757_p10 = pneg %p2756_p9 }
  0x21   : > { %p2762_p12 = pnand %p2760_p11, %p2757_p10 }
  0x23   : > { %2765 = shalt.err (!%p2762_p12)
}
  0x24   : > { %s2766_s28 = scalar_lea.vmem %s3179_s22, 2048  ;;  %p2774_p5 = scmp.lt.s32.totalorder %s3179_s22, %s3179_s22 }
  0x25   : > { %p2767_p13 = scmp.ne.s32.totalorder %s3179_s22, %s2766_s28  ;;  %p2775_p4 = scmp.lt.s32.totalorder %s2766_s28, %s2766_s28 }
  0x27   : > { %p2769_p0 = pnand %p2767_p13, %p3206_p8  ;;  %p2776_p7 = por %p2775_p4, %p2774_p5 }
  0x29   : > { %p2770_p2 = pneg %p2769_p0 }
  0x2b   : > { %p2777_p9 = pnand %p2776_p7, %p2770_p2 }
  0x2d   : > { %2780 = shalt.err (!%p2777_p9)
}
  0x2e   : > { %s3803_s30 = smov 128   ;;  %s3804_s12 = smov 8  }
  0x2f   : > { %2414 = dma.hbm_to_vmem [thread:$0]  (!%p3190_p6), %s3813_s3, 2048, %s3179_s22, [#allocation6], %s3803_s30, %s3803_s30, %s3804_s12  }
  0x30   : > { %s3815_s5 = sld [smem:[#allocation25_spill]] }
  0x36   : > { %s2781_s25 = scalar_lea.hbm %s3815_s5, 16 }
  0x37   : > { %p2782_p4 = scmp.ne.s32.totalorder %s3815_s5, %s2781_s25  ;;  %p2788_p12 = scmp.lt.u32.totalorder %s2781_s25, %s3815_s5 }
  0x39   : > { %p2784_p10 = pnand %p2782_p4, %p3206_p8 }
  0x3b   : > { %p2785_p11 = pneg %p2784_p10 }
  0x3d   : > { %p2790_p13 = pnand %p2788_p12, %p2785_p11 }
  0x3f   : > { %2793 = shalt.err (!%p2790_p13)
}
  0x40   : > { %s2794_s22 = scalar_lea.vmem %s3194_s26, 16  ;;  %s2801_s11 = scalar_lea.vmem %s3194_s26, 32 }
  0x41   : > { %p2795_p0 = scmp.ne.s32.totalorder %s3194_s26, %s2794_s22  ;;  %p2802_p7 = scmp.lt.s32.totalorder %s3194_s26, %s3194_s26 }
  0x42   : > { %p2803_p9 = scmp.lt.s32.totalorder %s2801_s11, %s2794_s22 }
  0x43   : > { %p2797_p2 = pnand %p2795_p0, %p3206_p8 }
  0x44   : > { %p2804_p4 = por %p2803_p9, %p2802_p7 }
  0x45   : > { %p2798_p5 = pneg %p2797_p2 }
  0x47   : > { %p2805_p10 = pnand %p2804_p4, %p2798_p5 }
  0x49   : > { %2808 = shalt.err (!%p2805_p10)
}
  0x4a   : > { %2420 = dma.hbm_to_vmem [thread:$0]  (!%p3190_p6), %s3815_s5, 16, %s3194_s26, [#allocation9]  }
  0x4b   : > { %s2809_s15 = scalar_lea.hbm %s3794_s7, 2048 }
  0x4c   : > { %p2810_p11 = scmp.ne.s32.totalorder %s3794_s7, %s2809_s15  ;;  %p2816_p0 = scmp.lt.u32.totalorder %s2809_s15, %s3794_s7 }
  0x4e   : > { %p2812_p12 = pnand %p2810_p11, %p3206_p8 }
  0x50   : > { %p2813_p13 = pneg %p2812_p12 }
  0x52   : > { %p2818_p2 = pnand %p2816_p0, %p2813_p13 }
  0x54   : > { %2821 = shalt.err (!%p2818_p2)
}
  0x55   : > { %s2822_s11 = scalar_lea.vmem %s367_s29, 2048  ;;  %p2830_p4 = scmp.lt.s32.totalorder %s367_s29, %s367_s29 }
  0x56   : > { %p2823_p5 = scmp.ne.s32.totalorder %s367_s29, %s2822_s11  ;;  %p2831_p10 = scmp.lt.s32.totalorder %s2822_s11, %s2822_s11 }
  0x58   : > { %p2825_p7 = pnand %p2823_p5, %p3206_p8  ;;  %p2832_p1 = por %p2831_p10, %p2830_p4 }
  0x5a   : > { %p2826_p9 = pneg %p2825_p7 }
  0x5c   : > { %p2833_p3 = pnand %p2832_p1, %p2826_p9 }
  0x5e   : > { %2836 = shalt.err (!%p2833_p3)
}
  0x5f   : > { %s3068_s26 = smov 64   ;;  %s3069_s2 = smov 4  }
  0x60   : > { %2426 = dma.hbm_to_vmem [thread:$0]  (!%p3190_p6), %s3794_s7, 2048, %s367_s29, [#allocation12], %s3068_s26, %s3068_s26, %s3069_s2  }
  0x61   : > { %s3070_s14 = smov [#allocation7]   ;;  %s3071_s21 = smov [#allocation10]  }
  0x62   : > { %s329_s15 = sshll.u32 %s3070_s14, 4  ;;  %s353_s25 = sshll.u32 %s3071_s21, 4  ;;  %s330_s15 = int_to_ptr.vmem [resolvable:$true] %s329_s15  ;;  %s354_s25 = int_to_ptr.vmem [resolvable:$true] %s353_s25 }
  0x63   : > { %s2837_s11 = scalar_lea.hbm %s3791_s4, 1024 }
  0x64   : > { %p2838_p1 = scmp.ne.s32.totalorder %s3791_s4, %s2837_s11  ;;  %p2844_p12 = scmp.lt.u32.totalorder %s2837_s11, %s3791_s4 }
  0x66   : > { %p2840_p3 = pnand %p2838_p1, %p3206_p8 }
  0x68   : > { %p2841_p11 = pneg %p2840_p3 }
  0x6a   : > { %p2846_p13 = pnand %p2844_p12, %p2841_p11 }
  0x6c   : > { %2849 = shalt.err (!%p2846_p13)
}
  0x6d   : > { %s2850_s29 = scalar_lea.vmem %s330_s15, 1024  ;;  %p2858_p7 = scmp.lt.s32.totalorder %s330_s15, %s330_s15 }
  0x6e   : > { %p2851_p0 = scmp.ne.s32.totalorder %s330_s15, %s2850_s29  ;;  %p2859_p9 = scmp.lt.s32.totalorder %s2850_s29, %s2850_s29 }
  0x70   : > { %p2853_p2 = pnand %p2851_p0, %p3206_p8  ;;  %p2860_p4 = por %p2859_p9, %p2858_p7 }
  0x72   : > { %p2854_p5 = pneg %p2853_p2 }
  0x74   : > { %p2861_p10 = pnand %p2860_p4, %p2854_p5 }
  0x76   : > { %2864 = shalt.err (!%p2861_p10)
}
  0x77   : > { %2417 = dma.hbm_to_vmem [thread:$0]  (!%p3190_p6), %s3791_s4, 1024, %s330_s15, [#allocation6], %s3068_s26, %s3068_s26, %s3069_s2  }
  0x78   : > { %s2865_s8 = scalar_lea.hbm %s3793_s6, 4096 }
  0x79   : > { %p2866_p1 = scmp.ne.s32.totalorder %s3793_s6, %s2865_s8  ;;  %p2872_p12 = scmp.lt.u32.totalorder %s2865_s8, %s3793_s6 }
  0x7b   : > { %p2868_p3 = pnand %p2866_p1, %p3206_p8 }
  0x7d   : > { %p2869_p11 = pneg %p2868_p3 }
  0x7f   : > { %p2874_p13 = pnand %p2872_p12, %p2869_p11 }
  0x81   : > { %2877 = shalt.err (!%p2874_p13)
}
  0x82   : > { %s2878_s22 = scalar_lea.vmem %s354_s25, 4096  ;;  %p2886_p7 = scmp.lt.s32.totalorder %s354_s25, %s354_s25 }
  0x83   : > { %p2879_p0 = scmp.ne.s32.totalorder %s354_s25, %s2878_s22  ;;  %p2887_p9 = scmp.lt.s32.totalorder %s2878_s22, %s2878_s22 }
  0x85   : > { %p2881_p2 = pnand %p2879_p0, %p3206_p8  ;;  %p2888_p4 = por %p2887_p9, %p2886_p7 }
  0x87   : > { %p2882_p5 = pneg %p2881_p2 }
  0x89   : > { %p2889_p10 = pnand %p2888_p4, %p2882_p5 }
  0x8b   : > { %2892 = shalt.err (!%p2889_p10)
}
  0x8c   : > { %s3072_s26 = smov 256   ;;  %s3073_s2 = smov 16  }
  0x8d   : > { %2423 = dma.hbm_to_vmem [thread:$0]  (!%p3190_p6), %s3793_s6, 4096, %s354_s25, [#allocation9], %s3072_s26, %s3072_s26, %s3073_s2  }
  0x8e   : > { %s3074_s29 = smov [#allocation13]   ;;  %s3075_s12 = smov [#allocation14]  }
  0x8f   : > { %s382_s30 = sshll.u32 %s3074_s29, 4  ;;  %s395_s3 = sshll.u32 %s3075_s12, 4  ;;  %s383_s30 = int_to_ptr.vmem [resolvable:$true] %s382_s30  ;;  %s396_s3 = int_to_ptr.vmem [resolvable:$true] %s395_s3 }
  0x90   : > { %s2893_s13 = scalar_lea.hbm %s3796_s9, 512 }
  0x91   : > { %p2894_p1 = scmp.ne.s32.totalorder %s3796_s9, %s2893_s13  ;;  %p2900_p12 = scmp.lt.u32.totalorder %s2893_s13, %s3796_s9 }
  0x93   : > { %p2896_p3 = pnand %p2894_p1, %p3206_p8 }
  0x95   : > { %p2897_p11 = pneg %p2896_p3 }
  0x97   : > { %p2902_p13 = pnand %p2900_p12, %p2897_p11 }
  0x99   : > { %2905 = shalt.err (!%p2902_p13)
}
  0x9a   : > { %s2906_s25 = scalar_lea.vmem %s383_s30, 512  ;;  %p2914_p7 = scmp.lt.s32.totalorder %s383_s30, %s383_s30 }
  0x9b   : > { %p2907_p0 = scmp.ne.s32.totalorder %s383_s30, %s2906_s25  ;;  %p2915_p9 = scmp.lt.s32.totalorder %s2906_s25, %s2906_s25 }
  0x9d   : > { %p2909_p2 = pnand %p2907_p0, %p3206_p8  ;;  %p2916_p4 = por %p2915_p9, %p2914_p7 }
  0x9f   : > { %p2910_p5 = pneg %p2909_p2 }
  0xa1   : > { %p2917_p10 = pnand %p2916_p4, %p2910_p5 }
  0xa3   : > { %2920 = shalt.err (!%p2917_p10)
}
  0xa4   : > { %2429 = dma.hbm_to_vmem [thread:$0]  (!%p3190_p6), %s3796_s9, 512, %s383_s30, [#allocation12], %s3072_s26, %s3072_s26, %s3073_s2  }
  0xa5   : > { %s2921_s5 = scalar_lea.hbm %s3797_s10, 512 }
  0xa6   : > { %p2922_p1 = scmp.ne.s32.totalorder %s3797_s10, %s2921_s5  ;;  %p2928_p12 = scmp.lt.u32.totalorder %s2921_s5, %s3797_s10 }
  0xa8   : > { %p2924_p3 = pnand %p2922_p1, %p3206_p8 }
  0xaa   : > { %p2925_p11 = pneg %p2924_p3 }
  0xac   : > { %p2930_p13 = pnand %p2928_p12, %p2925_p11 }
  0xae   : > { %2933 = shalt.err (!%p2930_p13)
}
  0xaf   : > { %s2934_s28 = scalar_lea.vmem %s396_s3, 512  ;;  %p2942_p7 = scmp.lt.s32.totalorder %s396_s3, %s396_s3 }
  0xb0   : > { %p2935_p0 = scmp.ne.s32.totalorder %s396_s3, %s2934_s28  ;;  %p2943_p9 = scmp.lt.s32.totalorder %s2934_s28, %s2934_s28 }
  0xb2   : > { %p2937_p2 = pnand %p2935_p0, %p3206_p8  ;;  %p2944_p4 = por %p2943_p9, %p2942_p7 }
  0xb4   : > { %p2938_p5 = pneg %p2937_p2 }
  0xb6   : > { %p2945_p10 = pnand %p2944_p4, %p2938_p5 }
  0xb8   : > { %2948 = shalt.err (!%p2945_p10)
}
  0xb9   : > { %2432 = dma.hbm_to_vmem [thread:$0]  (!%p3190_p6), %s3797_s10, 512, %s396_s3, [#allocation15], %s3072_s26, %s3072_s26, %s3073_s2  }
  0xba   : > { %s2141_s27 = sadd.s32 4294967294, %s3061_s20   ;;  %s3356_s16 = sadd.s32 1, %s3061_s20  }
  0xbb   : > { %s38_s25 = sadd.s32 1, %s3057_s19  ;;  %s35_s15 = ssub.s32 %s3061_s20, %s3356_s16 }
  0xbc   : > { %p45_p8 = scmp.ne.s32.totalorder %s3057_s19, %s3053_s18  ;;  %p36_p1 = scmp.eq.s32.totalorder %s35_s15, 0 }
  0xbd   : > { %p46_p3 = scmp.eq.s32.totalorder %s3061_s20, 0  ;;  %p51_p11 = scmp.ne.s32.totalorder %s3053_s18, %s3049_s17 }
  0xbe   : > { %p285_p12 = scmp.eq.s32.totalorder %s3174_s23, 1  ;;  %p3816_p0 = scmp.eq.s32.totalorder %s3174_s23, 0 }
  0xbf   : > { %s3368_s11 = scalar_select %p36_p1, %s3057_s19, %s38_s25  }
  0xc0   : > { %p47_p13 = por %p46_p3, %p45_p8  ;;  %p3372_p2 = por %p3816_p0, %p51_p11 }
  0xc1   : > { %p3376_p6 = por %p285_p12, %p45_p8  ;;  %p291_p5 = scmp.eq.s32.totalorder %s2141_s27, 1 }
  0xc2   : > { %p2448_p7 = scmp.lt.s32.totalorder %s3061_s20, 2  ;;  %s409_s2 = sand.u32 1, %s3057_s19  }
  0xc3   : > { %s3818_s26 = scalar_select %p3376_p6, 1, 0 }
  0xc4   : > { %p3382_p9 = por %p291_p5, %p51_p11  ;;  %s2151_s12 = sshll.u32 %s409_s2, 4 }
  0xc5   : > { %s2264_s5 = sshll.u32 %s3061_s20, 8  ;;  %s413_s21 = scalar_lea.vmem [#allocation2], %s2151_s12 }
  0xc6   : > { %s3819_s3 = scalar_select %p3382_p9, 1, 0 }
  0xc7   : > { %s3390_s14 = scalar_lea.hbm %s3787_s0, %s2264_s5  ;;  %s420_s28 = sshll.u32 %s413_s21, 4  ;;  %s3396_s28 = int_to_ptr.vmem [resolvable:$true] %s420_s28 }
  0xc8   : > { %p3392_p4 = pnand %p2448_p7, %p47_p13  ;;  %s3398_s22 = scalar_lea.sflag [#allocation3], %s409_s2 }
  0xc9   : > { %s2949_s27 = scalar_lea.hbm %s3390_s14, 256  ;;  %s2954_s12 = scalar_lea.hbm %s3787_s0, 512 }
  0xca   : > { %p2950_p10 = scmp.ne.s32.totalorder %s3390_s14, %s2949_s27  ;;  %p2951_p8 = pneg %p3392_p4 }
  0xcb   : > { %p2955_p11 = scmp.lt.u32.totalorder %s3390_s14, %s3787_s0  ;;  %p2956_p12 = scmp.lt.u32.totalorder %s2954_s12, %s2949_s27 }
  0xcc   : > { %p2952_p1 = pnand %p2951_p8, %p2950_p10  ;;  %p2958_p0 = scmp.lt.u32.totalorder %s2949_s27, %s3390_s14 }
  0xcd   : > { %p2957_p13 = por %p2956_p12, %p2955_p11 }
  0xce   : > { %p2953_p3 = pneg %p2952_p1 }
  0xcf   : > { %p2959_p5 = por %p2958_p0, %p2957_p13 }
  0xd1   : > { %p2960_p7 = pnand %p2959_p5, %p2953_p3 }
  0xd3   : > { %2963 = shalt.err (!%p2960_p7)
}
  0xd4   : > { %s2964_s2 = scalar_lea.vmem %s3396_s28, 256  ;;  %s3076_s13 = smov [#allocation2]  }
  0xd5   : > { %p2965_p10 = scmp.ne.s32.totalorder %s3396_s28, %s2964_s2  ;;  %s2969_s21 = sshll.u32 %s3076_s13, 4  ;;  %s2970_s21 = int_to_ptr.vmem [resolvable:$false] %s2969_s21 }
  0xd6   : > { %s2971_s25 = scalar_lea.vmem %s2970_s21, 512  ;;  %p2972_p6 = scmp.lt.s32.totalorder %s3396_s28, %s2970_s21 }
  0xd7   : > { %p2967_p1 = pnand %p2965_p10, %p2951_p8  ;;  %p2973_p11 = scmp.lt.s32.totalorder %s2971_s25, %s2964_s2 }
  0xd9   : > { %p2968_p9 = pneg %p2967_p1  ;;  %p2974_p12 = por %p2973_p11, %p2972_p6 }
  0xdb   : > { %p2975_p13 = pnand %p2974_p12, %p2968_p9 }
  0xdd   : > { %2978 = shalt.err (!%p2975_p13)
}
  0xde   : > { %s3821_s27 = smov 8   ;;  %s3822_s15 = smov 128  }
  0xdf   : > { %2436 = dma.hbm_to_vmem [thread:$0]  (!%p3392_p4), %s3390_s14, 256, %s3396_s28, %s3398_s22, %s3822_s15, %s3822_s15, %s3821_s27  }
  0xe0   : > { %p3823_p8 = scmp.ne.s32.totalorder %s3811_s24, 0 }
  0xe1   : > { %s3432_s12 = sand.u32 (!%p3823_p8), 1, %s3053_s18  }
  0xe2   : > { %432 = sbr.rel (%p3823_p8) target bundleno = 2898 (0xb52), region = 64  ;;  %s2155_s5 = sshll.u32 (!%p3823_p8), %s3432_s12, 4 }
  0xe3   : > { %s435_s8 = scalar_lea.sflag (!%p3823_p8), [#allocation3], %s3432_s12  ;;  %s3438_s30 = scalar_lea.vmem (!%p3823_p8), [#allocation2], %s2155_s5 }
  0xe9   : > { %3024 = dma.done.wait (%p3372_p2), %s435_s8, 256  }
  0xea   : > { %3026 = vsyncadd (%p3372_p2), %s435_s8, 4294967040  ;;  %p3824_p6 = scmp.eq.s32.totalorder %s3174_s23, 0 }
  0xec   : > { %3028 = dma.done.wait (%p3824_p6), [#allocation6], 3072   ;;  %p3825_p9 = pmov %p3824_p6 }
  0xed   : > { %p3826_p4 = pmov %p3824_p6 }
  0xee   : > { %3030 = vsyncadd (%p3825_p9), [#allocation6], 4294964224 }
  0xef   : > { %3032 = dma.done.wait (%p3826_p4), [#allocation9], 4112   ;;  %p3827_p3 = pmov %p3826_p4 }
  0xf1   : > { %3034 = vsyncadd (%p3827_p3), [#allocation9], 4294963184  ;;  %p3828_p0 = pmov %p3827_p3 }
  0xf3   : > { %3036 = dma.done.wait (%p3828_p0), [#allocation12], 2560   ;;  %p3829_p5 = pmov %p3828_p0 }
  0xf4   : > { %p3830_p2 = pmov %p3828_p0 }
  0xf5   : > { %3038 = vsyncadd (%p3829_p5), [#allocation12], 4294964736 }
  0xf6   : > { %3040 = dma.done.wait (%p3830_p2), [#allocation15], 512   ;;  %p3831_p7 = pmov %p3828_p0 }
  0xf7   : > { %v508_v0 = vld [vmem:[%s3438_s30] sm:$0xff]  ;;  %v509_v1 = vld [vmem:[%s3438_s30 + $0x8] sm:$0xff]  ;;  %v3077_v17 = vmov 0   ;;  %s3078_s14 = smov 127   ;;  %s3079_s28 = smov 1   ;;  %v682_v41 = vlaneseq  ;;  %vm768_vm2 = vcmask 130048  }
  0xf8   : > { %3042 = vsyncadd (%p3831_p7), [#allocation15], 4294966784  ;;  %v510_v2 = vmul.f32 %v508_v0, %v508_v0  ;;  %v2567_v3 = vld [vmem:[#allocation5 + $0x4] ss:$8 sps:$4 sm:$0xff]   ;;  %v2569_v4 = vld [vmem:[#allocation5] ss:$8 sps:$4 sm:$0xff]   ;;  %v511_v6 = vmul.f32 %v509_v1, %v509_v1  ;;  %663 = vmatprep.mubr.bf16.mxu0 %v3077_v17 }
  0xf9   : > { %v2570_v5 = vld [vmem:[#allocation5 + $0x14] ss:$8 sps:$4 sm:$0xff]   ;;  %631 = vmatprep.subr.bf16.mxu0 %v2567_v3  ;;  %v2572_v7 = vld [vmem:[#allocation5 + $0x10] ss:$8 sps:$4 sm:$0xff]   ;;  %v2573_v8 = vld [vmem:[#allocation5 + $0x24] ss:$8 sps:$4 sm:$0xff]  }
  0xfa   : > { %512 = vadd.xlane.f32.xlu0 %v510_v2  ;;  %632 = vmatpush1.bf16.msra.mxu0 %v2569_v4  ;;  %v2575_v9 = vld [vmem:[#allocation5 + $0x20] ss:$8 sps:$4 sm:$0xff]   ;;  %v2576_v10 = vld [vmem:[#allocation5 + $0x34] ss:$8 sps:$4 sm:$0xff]   ;;  %v2578_v11 = vld [vmem:[#allocation5 + $0x30] ss:$8 sps:$4 sm:$0xff]  }
  0xfb   : > { %633 = vmatprep.subr.bf16.mxu0 %v2570_v5  ;;  %v2579_v12 = vld [vmem:[#allocation5 + $0x44] ss:$8 sps:$4 sm:$0xff]   ;;  %v2581_v13 = vld [vmem:[#allocation5 + $0x40] ss:$8 sps:$4 sm:$0xff]   ;;  %v2582_v14 = vld [vmem:[#allocation5 + $0x54] ss:$8 sps:$4 sm:$0xff]  }
  0xfc   : > { %v2584_v15 = vld [vmem:[#allocation5 + $0x50] ss:$8 sps:$4 sm:$0xff]   ;;  %v2585_v16 = vld [vmem:[#allocation5 + $0x64] ss:$8 sps:$4 sm:$0xff]   ;;  %v2587_v18 = vld [vmem:[#allocation5 + $0x60] ss:$8 sps:$4 sm:$0xff]  }
  0xfd   : > { %v2588_v19 = vld [vmem:[#allocation5 + $0x74] ss:$8 sps:$4 sm:$0xff]   ;;  %v2590_v20 = vld [vmem:[#allocation5 + $0x70] ss:$8 sps:$4 sm:$0xff]   ;;  %v2164_v30 = vld [vmem:[%s3788_s1] ss:$0 sm:$0xff] }
  0xfe   : > { %514 = vadd.xlane.f32.xlu0 %v511_v6  ;;  %634 = vmatpush1.bf16.msra.mxu0 %v2572_v7  ;;  %v3467_v43 = vand.u32 127, %v682_v41  ;;  %v710_v46 = vld [vmem:[#allocation13] sm:$0xff]  ;;  %s3832_s13 = sld [smem:[#allocation26_spill]]  ;;  %v711_v50 = vld [vmem:[#allocation13 + $0x8] sm:$0xff]  ;;  %v712_v55 = vld [vmem:[#allocation13 + $0x10] sm:$0xff]  ;;  %s3080_s29 = smov 96  }
  0xff   : > { %635 = vmatprep.subr.bf16.mxu0 %v2573_v8  ;;  %v722_v52 = vld [vmem:[#allocation14] sm:$0xff]  ;;  %v713_v56 = vld [vmem:[#allocation13 + $0x18] sm:$0xff]  ;;  %v723_v63 = vld [vmem:[#allocation14 + $0x8] sm:$0xff]  ;;  %s3083_s22 = smov 64   ;;  %s3085_s2 = smov 16   ;;  %vm3089_vm5 = vmmov 0  }
 0x100   : > { %vm684_vm0 = vcmp.lt.s32.totalorder %v3467_v43, 127  ;;  %vm697_vm1 = vcmp.lt.s32.totalorder %v3467_v43, 1  ;;  %v724_v8 = vld [vmem:[#allocation14 + $0x10] sm:$0xff]  ;;  %s3087_s21 = smov 48   ;;  %s3088_s25 = smov 32   ;;  %vm1048_vm6 = vcmask 261120  }
 0x101   : > { %vm1051_vm7 = vcmask 392192   ;;  %vm1358_vm8 = vcmask 523264   ;;  %s3833_s15 = sld [smem:[#allocation23_spill]]  ;;  %s504_s8 = scalar_lea.vmem [#allocation16], %s2155_s5 }
 0x102   : > { %636 = vmatpush1.bf16.msra.mxu0 %v2575_v9  ;;  %v725_v9 = vld [vmem:[#allocation14 + $0x18] sm:$0xff]  ;;  %s2001_s24 = sshll.u32 %s504_s8, 4  ;;  %s1988_s5 = scalar_lea.sflag [#allocation4], %s3432_s12  ;;  %s3737_s24 = int_to_ptr.vmem [resolvable:$true] %s2001_s24 }
 0x103   : > { %637 = vmatprep.subr.bf16.mxu0 %v2576_v10  ;;  %p3835_p1 = scmp.ne.s32.totalorder %s3818_s26, 0 }
 0x104   : > { %v702_v49 = vld [vmem:[%s3832_s13] sm:$0xff]  ;;  %v703_v58 = vld [vmem:[%s3832_s13 + $0x8] sm:$0xff]  ;;  %v704_v61 = vld [vmem:[%s3832_s13 + $0x10] sm:$0xff] }
 0x105   : > { %v705_v62 = vld [vmem:[%s3832_s13 + $0x18] sm:$0xff] }
 0x106   : > { %638 = vmatpush1.bf16.msra.mxu0 %v2578_v11 }
 0x107   : > { %639 = vmatprep.subr.bf16.mxu0 %v2579_v12 }
 0x10a   : > { %640 = vmatpush1.bf16.msra.mxu0 %v2581_v13 }
 0x10b   : > { %641 = vmatprep.subr.bf16.mxu0 %v2582_v14 }
 0x10e   : > { %642 = vmatpush1.bf16.msra.mxu0 %v2584_v15 }
 0x10f   : > { %643 = vmatprep.subr.bf16.mxu0 %v2585_v16 }
 0x112   : > { %644 = vmatpush1.bf16.msra.mxu0 %v2587_v18 }
 0x113   : > { %645 = vmatprep.subr.bf16.mxu0 %v2588_v19 }
 0x116   : > { %646 = vmatpush1.bf16.msra.mxu0 %v2590_v20 }
 0x187   : > { %v513_v21 = vpop.xlane.xlu0 %512 }
 0x188   : > { %v517_v22 = vmul.f32 0.0078125, %v513_v21 }
 0x18a   : > { %v519_v23 = vadd.f32 1e-06, %v517_v22 }
 0x18b   : > { %v515_v24 = vpop.xlane.xlu0 %514 }
 0x18c   : > { %2663 = vrsqrt.f32 %v519_v23  ;;  %v518_v25 = vmul.f32 0.0078125, %v515_v24 }
 0x18e   : > { %v520_v26 = vadd.f32 1e-06, %v518_v25 }
 0x190   : > { %2665 = vrsqrt.f32 %v520_v26 }
 0x196   : > { %v2664_v27 = vpop.eup %2663 }
 0x197   : > { %v523_v28 = vmul.f32 %v2664_v27, %v508_v0 }
 0x199   : > { %v532_v32 = vmul.f32 %v2164_v30, %v523_v28 }
 0x19a   : > { %v2666_v29 = vpop.eup %2665 }
 0x19b   : > { %v524_v31 = vmul.f32 %v2666_v29, %v509_v1 }
 0x19d   : > { %v533_v33 = vmul.f32 %v2164_v30, %v524_v31 }
 0x19f   : > { %v534_v34 = vpack.c.bf16 %v533_v33, %v532_v32 }
 0x1a1   : > { %664 = vmatmul.mubr.bf16.vlgmr.msra.gmra.mrb[0].mxu0 %v534_v34 }
 0x274   : > { %v665_v35 = vpop.f32.mrb[0].mxu0 }
 0x275   : > { %674 = vrot.lane.b32.xlu1 %v665_v35, %s3078_s14  ;;  %v667_v36 = vpop.f32.mrb[1].mxu0  ;;  %v706_v57 = vmul.f32 %v702_v49, %v665_v35 }
 0x276   : > { %678 = vrot.lane.b32.xlu0 %v667_v36, %s3078_s14  ;;  %v669_v37 = vpop.f32.mrb[2].mxu0  ;;  %v707_v6 = vmul.f32 %v703_v58, %v667_v36 }
 0x277   : > { %v671_v38 = vpop.f32.mrb[3].mxu0  ;;  %v708_v10 = vmul.f32 %v704_v61, %v669_v37 }
 0x278   : > { %v709_v11 = vmul.f32 %v705_v62, %v671_v38 }
 0x279   : > { %689 = vrot.lane.b32.xlu1 %v665_v35, %s3079_s28 }
 0x27d   : > { %693 = vrot.lane.b32.xlu1 %v667_v36, %s3079_s28 }
 0x281   : > { %676 = vrot.lane.b32.xlu1 %v669_v37, %s3078_s14 }
 0x285   : > { %691 = vrot.lane.b32.xlu1 %v669_v37, %s3079_s28 }
 0x289   : > { %680 = vrot.lane.b32.xlu1 %v671_v38, %s3078_s14  ;;  %s3081_s14 = smov 112  }
 0x28d   : > { %695 = vrot.lane.b32.xlu1 %v671_v38, %s3079_s28  ;;  %s3082_s28 = smov 80  }
 0x2e7   : > { %v675_v39 = vpop.permute.xlu1 %674 }
 0x2e8   : > { %v679_v45 = vpop.permute.xlu0 %678 }
 0x2e9   : > { %v685_v47 = vsel %vm684_vm0, %v675_v39, %v679_v45  ;;  %v687_v51 = vsel %vm684_vm0, %v679_v45, %v675_v39 }
 0x2ea   : > { %v714_v54 = vmul.f32 %v710_v46, %v685_v47  ;;  %v715_v59 = vmul.f32 %v711_v50, %v687_v51 }
 0x2eb   : > { %v690_v40 = vpop.permute.xlu1 %689 }
 0x2ec   : > { %v718_v7 = vadd.f32 %v714_v54, %v706_v57  ;;  %v719_v14 = vadd.f32 %v715_v59, %v707_v6  ;;  %v3084_v54 = vmov -1e+09  }
 0x2ef   : > { %v694_v42 = vpop.permute.xlu1 %693 }
 0x2f0   : > { %v700_v53 = vsel %vm697_vm1, %v694_v42, %v690_v40  ;;  %v698_v0 = vsel %vm697_vm1, %v690_v40, %v694_v42 }
 0x2f1   : > { %v726_v1 = vmul.f32 %v722_v52, %v700_v53  ;;  %v727_v12 = vmul.f32 %v723_v63, %v698_v0  ;;  %v737_v52 = vshrl.u32 %v682_v41, 7 }
 0x2f3   : > { %v677_v44 = vpop.permute.xlu1 %676  ;;  %v730_v15 = vadd.f32 %v726_v1, %v718_v7  ;;  %v731_v23 = vadd.f32 %v727_v12, %v719_v14  ;;  %v738_v53 = vadd.s32 8, %v737_v52  ;;  %vm739_vm3 = vcmp.ge.s32.totalorder %v737_v52, %v3467_v43 }
 0x2f5   : > { %v734_v26 = vmul.f32 0.25, %v730_v15  ;;  %vm740_vm4 = vcmp.ge.s32.totalorder %v738_v53, %v3467_v43 }
 0x2f6   : > { %v742_v58 = vsel %vm740_vm4, 0.0, %v3084_v54 }
 0x2f7   : > { %v692_v48 = vpop.permute.xlu1 %691 }
 0x2fb   : > { %v681_v60 = vpop.permute.xlu1 %680 }
 0x2fc   : > { %v686_v2 = vsel %vm684_vm0, %v677_v44, %v681_v60  ;;  %v688_v3 = vsel %vm684_vm0, %v681_v60, %v677_v44 }
 0x2fd   : > { %v716_v4 = vmul.f32 %v712_v55, %v686_v2  ;;  %v717_v5 = vmul.f32 %v713_v56, %v688_v3  ;;  %v741_v55 = vsel %vm739_vm3, 0.0, %v3084_v54 }
 0x2ff   : > { %v696_v13 = vpop.permute.xlu1 %695  ;;  %v720_v19 = vadd.f32 %v716_v4, %v708_v10  ;;  %v721_v20 = vadd.f32 %v717_v5, %v709_v11 }
 0x300   : > { %v699_v16 = vsel %vm697_vm1, %v692_v48, %v696_v13  ;;  %v701_v18 = vsel %vm697_vm1, %v696_v13, %v692_v48 }
 0x301   : > { %v728_v21 = vmul.f32 %v724_v8, %v701_v18  ;;  %v729_v22 = vmul.f32 %v725_v9, %v699_v16 }
 0x303   : > { %v732_v24 = vadd.f32 %v728_v21, %v720_v19  ;;  %v733_v25 = vadd.f32 %v729_v22, %v721_v20 }
 0x305   : > { %v735_v27 = vmul.f32 0.25, %v732_v24  ;;  %v3499_v28 = vpack.c.bf16 %v733_v25, %v731_v23 }
 0x307   : > { %2377 = vmatprep.subr.msk.bf16.mxu1 %vm768_vm2, %v3499_v28  ;;  %v782_v29 = vsel %vm768_vm2, %v3499_v28, 0  ;;  %v2522_v30 = vpack.i.bf16 %v735_v27, %v734_v26  ;;  %v764_v31 = vpack.c.bf16 %v735_v27, %v734_v26 }
 0x308   : > { %2318 = vmatpush3.bf16.xpose.msra.mxu1 %v782_v29 }
 0x309   : > { %2523 = vrot.lane.b32.xlu0 %v2522_v30, %s3080_s29  ;;  %2518 = vrot.lane.b32.xlu1 %v2522_v30, %s3081_s14 }
 0x30a   : > { %2319 = vmatprep.mubr.msk.bf16.mxu1 %vm768_vm2, %v764_v31 }
 0x30d   : > { %2528 = vrot.lane.b32.xlu1 %v2522_v30, %s3082_s28  ;;  %1066 = vrot.lane.b32.xlu0 %v3499_v28, %s3081_s14 }
 0x311   : > { %1058 = vrot.lane.b32.xlu1 %v764_v31, %s3083_s22 }
 0x37b   : > { %v2524_v32 = vpop.permute.xlu0 %2523  ;;  %v2519_v33 = vpop.permute.xlu1 %2518 }
 0x37c   : > { %v2526_v34 = vunpack.i.h.bf16 %v2524_v32  ;;  %v2525_v35 = vunpack.i.l.bf16 %v2524_v32  ;;  %v2521_v36 = vunpack.i.h.bf16 %v2519_v33  ;;  %v2520_v37 = vunpack.i.l.bf16 %v2519_v33 }
 0x37e   : > { %v766_v38 = vpack.c.bf16 %v2526_v34, %v2525_v35  ;;  %v765_v39 = vpack.c.bf16 %v2521_v36, %v2520_v37 }
 0x37f   : > { %v2529_v40 = vpop.permute.xlu1 %2528  ;;  %v1067_v42 = vpop.permute.xlu0 %1066 }
 0x380   : > { %v2531_v44 = vunpack.i.h.bf16 %v2529_v40  ;;  %v2530_v45 = vunpack.i.l.bf16 %v2529_v40  ;;  %v1081_v46 = vsel %vm768_vm2, %v1067_v42, 0  ;;  %1062 = vrot.lane.b32.xlu1 %v766_v38, %s3083_s22  ;;  %1060 = vrot.lane.b32.xlu0 %v765_v39, %s3083_s22 }
 0x381   : > { %2320 = vmatmul.mubr.msk.bf16.vlgmr.msra.gmra.mrb[0].mxu1 %vm768_vm2, %v765_v39  ;;  %2378 = vmatprep.subr.msk.bf16.mxu0 %vm768_vm2, %v1067_v42 }
 0x382   : > { %v767_v47 = vpack.c.bf16 %v2531_v44, %v2530_v45  ;;  %2323 = vmatprep.mubr.msk.bf16.mxu1 %vm768_vm2, %v766_v38  ;;  %2338 = vmatpush3.bf16.xpose.msra.mxu0 %v1081_v46 }
 0x383   : > { %v1059_v48 = vpop.permute.xlu1 %1058 }
 0x384   : > { %2339 = vmatprep.mubr.msk.bf16.mxu0 %vm768_vm2, %v1059_v48  ;;  %1064 = vrot.lane.b32.xlu0 %v767_v47, %s3083_s22 }
 0x389   : > { %2324 = vmatmul.mubr.msk.bf16.gmra.mrb[4].mxu1 %vm768_vm2, %v767_v47 }
 0x3f2   : > { %v1063_v49 = vpop.permute.xlu1 %1062  ;;  %v1061_v50 = vpop.permute.xlu0 %1060 }
 0x3f3   : > { %2340 = vmatmul.mubr.msk.bf16.vlgmr.msra.gmra.mrb[4].mxu0 %vm768_vm2, %v1061_v50 }
 0x3f4   : > { %2343 = vmatprep.mubr.msk.bf16.mxu0 %vm768_vm2, %v1063_v49 }
 0x3f6   : > { %v1065_v51 = vpop.permute.xlu0 %1064 }
 0x3fb   : > { %2344 = vmatmul.mubr.msk.bf16.gmra.mrb[8].mxu0 %vm768_vm2, %v1065_v51 }
 0x454   : > { %v2321_v56 = vpop.f32.mrb[0].mxu1 }
 0x455   : > { %v818_v57 = vpop.f32.mrb[1].mxu1  ;;  %v3533_v0 = vadd.f32 %v2321_v56, %v741_v55 }
 0x456   : > { %v3525_v59 = vadd.f32 %v818_v57, %v741_v55  ;;  %v2322_v60 = vpop.f32.mrb[2].mxu1 }
 0x457   : > { %v821_v61 = vpop.f32.mrb[3].mxu1  ;;  %v3527_v62 = vadd.f32 %v2322_v60, %v742_v58  ;;  %v855_v6 = vsel %vm768_vm2, %v3533_v0, -inf }
 0x458   : > { %v3529_v63 = vadd.f32 %v821_v61, %v742_v58  ;;  %v849_v41 = vsel %vm768_vm2, %v3525_v59, -inf }
 0x459   : > { %850 = vmax.xlane.f32.xlu1 %v849_v41  ;;  %v858_v2 = vsel %vm768_vm2, %v3527_v62, -inf }
 0x45a   : > { %v852_v43 = vsel %vm768_vm2, %v3529_v63, -inf }
 0x45b   : > { %853 = vmax.xlane.f32.xlu0 %v852_v43 }
 0x45c   : > { %v2325_v1 = vpop.f32.mrb[4].mxu1 }
 0x45d   : > { %v834_v3 = vpop.f32.mrb[5].mxu1  ;;  %859 = vmax.xlane.f32.xlu1 %v858_v2  ;;  %v3545_v9 = vadd.f32 %v2325_v1, %v741_v55 }
 0x45e   : > { %v3539_v4 = vadd.f32 %v834_v3, %v741_v55  ;;  %v2326_v5 = vpop.f32.mrb[6].mxu1 }
 0x45f   : > { %v837_v7 = vpop.f32.mrb[7].mxu1  ;;  %856 = vmax.xlane.f32.xlu0 %v855_v6  ;;  %v3547_v10 = vadd.f32 %v2326_v5, %v742_v58  ;;  %v867_v13 = vsel %vm768_vm2, %v3545_v9, -inf }
 0x460   : > { %v3543_v8 = vadd.f32 %v837_v7, %v742_v58  ;;  %v861_v11 = vsel %vm768_vm2, %v3539_v4, -inf }
 0x461   : > { %v870_v14 = vsel %vm768_vm2, %v3547_v10, -inf }
 0x462   : > { %v864_v12 = vsel %vm768_vm2, %v3543_v8, -inf }
 0x463   : > { %862 = vmax.xlane.f32.xlu0 %v861_v11  ;;  %865 = vmax.xlane.f32.xlu1 %v864_v12 }
 0x467   : > { %868 = vmax.xlane.f32.xlu0 %v867_v13  ;;  %871 = vmax.xlane.f32.xlu1 %v870_v14 }
 0x4c6   : > { %v2341_v15 = vpop.f32.mrb[4].mxu0 }
 0x4c7   : > { %v1117_v16 = vpop.f32.mrb[5].mxu0  ;;  %v3559_v21 = vadd.f32 %v2341_v15, %v741_v55 }
 0x4c8   : > { %v3557_v18 = vadd.f32 %v1117_v16, %v741_v55  ;;  %v2342_v19 = vpop.f32.mrb[6].mxu0 }
 0x4c9   : > { %v1120_v20 = vpop.f32.mrb[7].mxu0  ;;  %v3565_v24 = vadd.f32 %v2342_v19, %v742_v58  ;;  %v1154_v27 = vsel %vm768_vm2, %v3559_v21, -inf }
 0x4ca   : > { %v3561_v22 = vadd.f32 %v1120_v20, %v742_v58  ;;  %v1148_v23 = vsel %vm768_vm2, %v3557_v18, -inf }
 0x4cb   : > { %1149 = vmax.xlane.f32.xlu0 %v1148_v23  ;;  %v1157_v32 = vsel %vm768_vm2, %v3565_v24, -inf }
 0x4cc   : > { %v1151_v25 = vsel %vm768_vm2, %v3561_v22, -inf }
 0x4cd   : > { %1152 = vmax.xlane.f32.xlu1 %v1151_v25 }
 0x4ce   : > { %v2345_v26 = vpop.f32.mrb[8].mxu0 }
 0x4cf   : > { %v1133_v29 = vpop.f32.mrb[9].mxu0  ;;  %1155 = vmax.xlane.f32.xlu0 %v1154_v27  ;;  %v3575_v34 = vadd.f32 %v2345_v26, %v741_v55 }
 0x4d0   : > { %v3571_v30 = vadd.f32 %v1133_v29, %v741_v55  ;;  %v2346_v31 = vpop.f32.mrb[10].mxu0 }
 0x4d1   : > { %v1136_v33 = vpop.f32.mrb[11].mxu0  ;;  %1158 = vmax.xlane.f32.xlu1 %v1157_v32  ;;  %v3581_v37 = vadd.f32 %v2346_v31, %v742_v58  ;;  %v1166_v39 = vsel %vm768_vm2, %v3575_v34, -inf }
 0x4d2   : > { %v3577_v35 = vadd.f32 %v1136_v33, %v742_v58  ;;  %v1160_v36 = vsel %vm768_vm2, %v3571_v30, -inf }
 0x4d3   : > { %1161 = vmax.xlane.f32.xlu0 %v1160_v36  ;;  %v1169_v40 = vsel %vm768_vm2, %v3581_v37, -inf }
 0x4d4   : > { %v1163_v38 = vsel %vm768_vm2, %v3577_v35, -inf }
 0x4d5   : > { %1164 = vmax.xlane.f32.xlu1 %v1163_v38 }
 0x4d7   : > { %1167 = vmax.xlane.f32.xlu0 %v1166_v39 }
 0x4d9   : > { %1170 = vmax.xlane.f32.xlu1 %v1169_v40 }
 0x4e6   : > { %v851_v42 = vpop.xlane.xlu1 %850 }
 0x4e7   : > { %v873_v47 = vsub.f32 %v3525_v59, %v851_v42 }
 0x4e8   : > { %v854_v44 = vpop.xlane.xlu0 %853 }
 0x4e9   : > { %v874_v45 = vsub.f32 %v3529_v63, %v854_v44  ;;  %v881_v53 = vmul.f32 1.442695, %v873_v47 }
 0x4ea   : > { %v860_v46 = vpop.xlane.xlu1 %859 }
 0x4eb   : > { %v876_v48 = vsub.f32 %v3527_v62, %v860_v46  ;;  %v883_v49 = vmul.f32 1.442695, %v874_v45 }
 0x4ec   : > { %v857_v50 = vpop.xlane.xlu0 %856 }
 0x4ed   : > { %v887_v51 = vmul.f32 1.442695, %v876_v48  ;;  %v875_v52 = vsub.f32 %v3533_v0, %v857_v50 }
 0x4ef   : > { %2667 = vpow2.f32 %v887_v51  ;;  %v885_v54 = vmul.f32 1.442695, %v875_v52 }
 0x4f0   : > { %2669 = vpow2.f32 %v883_v49  ;;  %v863_v55 = vpop.xlane.xlu0 %862  ;;  %v866_v56 = vpop.xlane.xlu1 %865 }
 0x4f1   : > { %2671 = vpow2.f32 %v885_v54  ;;  %v877_v57 = vsub.f32 %v3539_v4, %v863_v55  ;;  %v878_v58 = vsub.f32 %v3543_v8, %v866_v56 }
 0x4f2   : > { %2673 = vpow2.f32 %v881_v53 }
 0x4f3   : > { %v889_v63 = vmul.f32 1.442695, %v877_v57  ;;  %v891_v43 = vmul.f32 1.442695, %v878_v58 }
 0x4f4   : > { %v869_v59 = vpop.xlane.xlu0 %868  ;;  %v872_v60 = vpop.xlane.xlu1 %871 }
 0x4f5   : > { %v879_v61 = vsub.f32 %v3545_v9, %v869_v59  ;;  %v880_v62 = vsub.f32 %v3547_v10, %v872_v60 }
 0x4f7   : > { %v893_v41 = vmul.f32 1.442695, %v879_v61  ;;  %v895_v0 = vmul.f32 1.442695, %v880_v62 }
 0x4f9   : > { %v3597_v1 = vpop.eup %2667  ;;  %2675 = vpow2.f32 %v893_v41 }
 0x4fa   : > { %v3599_v2 = vpop.eup %2669  ;;  %2677 = vpow2.f32 %v895_v0  ;;  %v906_v3 = vsel %vm768_vm2, %v3597_v1, 0.0 }
 0x4fb   : > { %v3603_v4 = vpop.eup %2671  ;;  %2679 = vpow2.f32 %v889_v63  ;;  %907 = vadd.xlane.f32.xlu1 %v906_v3  ;;  %v900_v7 = vsel %vm768_vm2, %v3599_v2, 0.0 }
 0x4fc   : > { %2681 = vpow2.f32 %v891_v43  ;;  %v903_v5 = vsel %vm768_vm2, %v3603_v4, 0.0  ;;  %v3607_v6 = vpop.eup %2673 }
 0x4fd   : > { %904 = vadd.xlane.f32.xlu0 %v903_v5  ;;  %v897_v8 = vsel %vm768_vm2, %v3607_v6, 0.0 }
 0x4ff   : > { %901 = vadd.xlane.f32.xlu1 %v900_v7 }
 0x501   : > { %898 = vadd.xlane.f32.xlu0 %v897_v8 }
 0x503   : > { %v3613_v9 = vpop.eup %2675 }
 0x504   : > { %v3615_v10 = vpop.eup %2677  ;;  %v915_v11 = vsel %vm768_vm2, %v3613_v9, 0.0 }
 0x505   : > { %v3619_v12 = vpop.eup %2679  ;;  %916 = vadd.xlane.f32.xlu0 %v915_v11  ;;  %v918_v13 = vsel %vm768_vm2, %v3615_v10, 0.0 }
 0x506   : > { %v3623_v14 = vpop.eup %2681  ;;  %919 = vadd.xlane.f32.xlu1 %v918_v13  ;;  %v909_v15 = vsel %vm768_vm2, %v3619_v12, 0.0 }
 0x507   : > { %v912_v16 = vsel %vm768_vm2, %v3623_v14, 0.0 }
 0x509   : > { %910 = vadd.xlane.f32.xlu0 %v909_v15 }
 0x50a   : > { %913 = vadd.xlane.f32.xlu1 %v912_v16 }
 0x558   : > { %v1150_v19 = vpop.xlane.xlu0 %1149 }
 0x559   : > { %v1172_v20 = vsub.f32 %v3557_v18, %v1150_v19 }
 0x55a   : > { %v1153_v23 = vpop.xlane.xlu1 %1152 }
 0x55b   : > { %v1173_v26 = vsub.f32 %v3561_v22, %v1153_v23  ;;  %v1180_v29 = vmul.f32 1.442695, %v1172_v20 }
 0x55c   : > { %v1156_v25 = vpop.xlane.xlu0 %1155 }
 0x55d   : > { %v1174_v27 = vsub.f32 %v3559_v21, %v1156_v25  ;;  %v1182_v38 = vmul.f32 1.442695, %v1173_v26 }
 0x55e   : > { %v1159_v31 = vpop.xlane.xlu1 %1158 }
 0x55f   : > { %v1184_v32 = vmul.f32 1.442695, %v1174_v27  ;;  %v1175_v33 = vsub.f32 %v3565_v24, %v1159_v31 }
 0x560   : > { %v1162_v36 = vpop.xlane.xlu0 %1161 }
 0x561   : > { %2683 = vpow2.f32 %v1184_v32  ;;  %v1186_v39 = vmul.f32 1.442695, %v1175_v33  ;;  %v1176_v40 = vsub.f32 %v3571_v30, %v1162_v36 }
 0x562   : > { %2685 = vpow2.f32 %v1180_v29  ;;  %v1165_v42 = vpop.xlane.xlu1 %1164 }
 0x563   : > { %2687 = vpow2.f32 %v1186_v39  ;;  %v1177_v22 = vsub.f32 %v3577_v35, %v1165_v42  ;;  %v1188_v44 = vmul.f32 1.442695, %v1176_v40 }
 0x564   : > { %v1168_v18 = vpop.xlane.xlu0 %1167  ;;  %2689 = vpow2.f32 %v1182_v38 }
 0x565   : > { %v1178_v21 = vsub.f32 %v3575_v34, %v1168_v18  ;;  %v1190_v47 = vmul.f32 1.442695, %v1177_v22 }
 0x566   : > { %v1171_v45 = vpop.xlane.xlu1 %1170 }
 0x567   : > { %v1192_v46 = vmul.f32 1.442695, %v1178_v21  ;;  %v1179_v24 = vsub.f32 %v3581_v37, %v1171_v45 }
 0x569   : > { %2691 = vpow2.f32 %v1192_v46  ;;  %v1194_v48 = vmul.f32 1.442695, %v1179_v24 }
 0x56a   : > { %2693 = vpow2.f32 %v1188_v44 }
 0x56b   : > { %v3637_v49 = vpop.eup %2683  ;;  %2695 = vpow2.f32 %v1194_v48 }
 0x56c   : > { %v3639_v30 = vpop.eup %2685  ;;  %v1202_v50 = vsel %vm768_vm2, %v3637_v49, 0.0  ;;  %2697 = vpow2.f32 %v1190_v47 }
 0x56d   : > { %v3643_v35 = vpop.eup %2687  ;;  %1203 = vadd.xlane.f32.xlu0 %v1202_v50  ;;  %v1196_v51 = vsel %vm768_vm2, %v3639_v30, 0.0 }
 0x56e   : > { %v1205_v34 = vsel %vm768_vm2, %v3643_v35, 0.0  ;;  %v3647_v37 = vpop.eup %2689 }
 0x56f   : > { %1206 = vadd.xlane.f32.xlu1 %v1205_v34  ;;  %v1199_v52 = vsel %vm768_vm2, %v3647_v37, 0.0 }
 0x571   : > { %1197 = vadd.xlane.f32.xlu0 %v1196_v51 }
 0x573   : > { %v3653_v53 = vpop.eup %2691  ;;  %1200 = vadd.xlane.f32.xlu1 %v1199_v52 }
 0x574   : > { %v3655_v54 = vpop.eup %2693  ;;  %v1214_v55 = vsel %vm768_vm2, %v3653_v53, 0.0 }
 0x575   : > { %v3659_v56 = vpop.eup %2695  ;;  %1215 = vadd.xlane.f32.xlu0 %v1214_v55  ;;  %v1208_v59 = vsel %vm768_vm2, %v3655_v54, 0.0 }
 0x576   : > { %v1217_v57 = vsel %vm768_vm2, %v3659_v56, 0.0  ;;  %v3663_v58 = vpop.eup %2697 }
 0x577   : > { %1218 = vadd.xlane.f32.xlu1 %v1217_v57  ;;  %v1211_v60 = vsel %vm768_vm2, %v3663_v58, 0.0 }
 0x579   : > { %1209 = vadd.xlane.f32.xlu0 %v1208_v59 }
 0x57b   : > { %1212 = vadd.xlane.f32.xlu1 %v1211_v60 }
 0x588   : > { %v908_v61 = vpop.xlane.xlu1 %907 }
 0x589   : > { %2699 = vrcp.f32 %v908_v61 }
 0x58a   : > { %v905_v62 = vpop.xlane.xlu0 %904 }
 0x58b   : > { %2701 = vrcp.f32 %v905_v62 }
 0x58c   : > { %v902_v63 = vpop.xlane.xlu1 %901  ;;  %1240 = vrot.lane.b32.xlu1 %v3499_v28, %s3082_s28 }
 0x58d   : > { %2703 = vrcp.f32 %v902_v63 }
 0x58e   : > { %v899_v41 = vpop.xlane.xlu0 %898 }
 0x58f   : > { %2705 = vrcp.f32 %v899_v41  ;;  %942 = vrot.lane.b32.xlu0 %v3499_v28, %s3080_s29  ;;  %s2265_s29 = sshll.u32 %s3174_s23, 8  ;;  %s2979_s23 = scalar_lea.vmem %s3737_s24, 256 }
 0x590   : > { %p2980_p10 = scmp.ne.s32.totalorder %s3737_s24, %s2979_s23 }
 0x592   : > { %v917_v19 = vpop.xlane.xlu0 %916  ;;  %p2981_p11 = pnand %p2980_p10, %p3835_p1 }
 0x593   : > { %v2700_v0 = vpop.eup %2699  ;;  %v920_v20 = vpop.xlane.xlu1 %919 }
 0x594   : > { %v932_v3 = vmul.f32 %v2700_v0, %v3597_v1  ;;  %p2982_p12 = pneg %p2981_p11 }
 0x595   : > { %v2702_v43 = vpop.eup %2701 }
 0x596   : > { %v931_v5 = vmul.f32 %v2702_v43, %v3603_v4  ;;  %v911_v23 = vpop.xlane.xlu0 %910 }
 0x597   : > { %v2704_v7 = vpop.eup %2703  ;;  %v914_v28 = vpop.xlane.xlu1 %913  ;;  %2707 = vrcp.f32 %v911_v23  ;;  %v2591_v23 = vld [vmem:[#allocation7] sm:$0xff]  }
 0x598   : > { %v938_v8 = vpack.c.bf16 %v932_v3, %v931_v5  ;;  %v930_v15 = vmul.f32 %v2704_v7, %v3599_v2  ;;  %2709 = vrcp.f32 %v914_v28 }
 0x599   : > { %v2706_v11 = vpop.eup %2705  ;;  %2711 = vrcp.f32 %v917_v19 }
 0x59a   : > { %v929_v13 = vmul.f32 %v2706_v11, %v3607_v6  ;;  %2713 = vrcp.f32 %v920_v20 }
 0x59c   : > { %v937_v16 = vpack.c.bf16 %v930_v15, %v929_v13 }
 0x59e   : > { %2329 = vmatprep.mubr.msk.bf16.mxu1 %vm768_vm2, %v937_v16 }
 0x5a1   : > { %v2708_v6 = vpop.eup %2707 }
 0x5a2   : > { %v2710_v31 = vpop.eup %2709  ;;  %v933_v36 = vmul.f32 %v2708_v6, %v3619_v12  ;;  %v2597_v6 = vld [vmem:[#allocation7 + $0x30] sm:$0xff]  }
 0x5a3   : > { %v934_v38 = vmul.f32 %v2710_v31, %v3623_v14  ;;  %v2712_v40 = vpop.eup %2711  ;;  %v2598_v31 = vld [vmem:[#allocation7 + $0x38] sm:$0xff]  }
 0x5a4   : > { %v2714_v42 = vpop.eup %2713  ;;  %v935_v14 = vmul.f32 %v2712_v40, %v3613_v9 }
 0x5a5   : > { %v939_v18 = vpack.c.bf16 %v934_v38, %v933_v36  ;;  %v936_v21 = vmul.f32 %v2714_v42, %v3615_v10 }
 0x5a7   : > { %v940_v46 = vpack.c.bf16 %v936_v21, %v935_v14 }
 0x5fa   : > { %v1204_v25 = vpop.xlane.xlu0 %1203 }
 0x5fc   : > { %v1207_v26 = vpop.xlane.xlu1 %1206 }
 0x5fe   : > { %v1198_v1 = vpop.xlane.xlu0 %1197 }
 0x600   : > { %v1201_v4 = vpop.xlane.xlu1 %1200 }
 0x601   : > { %2715 = vrcp.f32 %v1201_v4  ;;  %v2594_v4 = vld [vmem:[#allocation7 + $0x18] sm:$0xff]  }
 0x602   : > { %v1216_v27 = vpop.xlane.xlu0 %1215  ;;  %2717 = vrcp.f32 %v1198_v1  ;;  %v2593_v1 = vld [vmem:[#allocation7 + $0x10] sm:$0xff]  }
 0x603   : > { %2719 = vrcp.f32 %v1207_v26  ;;  %v2592_v26 = vld [vmem:[#allocation7 + $0x8] sm:$0xff]  }
 0x604   : > { %v1219_v29 = vpop.xlane.xlu1 %1218 }
 0x606   : > { %v1210_v2 = vpop.xlane.xlu0 %1209 }
 0x608   : > { %v1213_v32 = vpop.xlane.xlu1 %1212 }
 0x609   : > { %2721 = vrcp.f32 %v1213_v32 }
 0x60a   : > { %v943_v33 = vpop.permute.xlu0 %942  ;;  %2723 = vrcp.f32 %v1204_v25  ;;  %v3086_v25 = vmov 0.0  }
 0x60b   : > { %2327 = vmatprep.subr.bf16.mxu1 %v943_v33  ;;  %v2716_v22 = vpop.eup %2715  ;;  %2725 = vrcp.f32 %v1210_v2  ;;  %2357 = vmatprep.subr.bf16.mxu0 %v3086_v25 }
 0x60c   : > { %2328 = vmatpush3.bf16.msra.mxu1 %v943_v33  ;;  %v1241_v39 = vpop.permute.xlu1 %1240  ;;  %v2718_v12 = vpop.eup %2717  ;;  %v1229_v44 = vmul.f32 %v2716_v22, %v3647_v37  ;;  %2727 = vrcp.f32 %v1219_v29  ;;  %2358 = vmatpush3.bf16.msra.mxu0 %v2591_v23  ;;  %v2596_v29 = vld [vmem:[#allocation7 + $0x28] sm:$0xff]  }
 0x60d   : > { %2347 = vmatprep.subr.bf16.mxu1 %v1241_v39  ;;  %v1228_v45 = vmul.f32 %v2718_v12, %v3639_v30  ;;  %v2720_v24 = vpop.eup %2719  ;;  %2729 = vrcp.f32 %v1216_v27  ;;  %2359 = vmatprep.subr.bf16.mxu0 %v3086_v25  ;;  %v2595_v27 = vld [vmem:[#allocation7 + $0x20] sm:$0xff]  }
 0x60e   : > { %v1231_v9 = vmul.f32 %v2720_v24, %v3643_v35  ;;  %2373 = vmatprep.mubr.msk.bf16.mxu0 %vm3089_vm5, %v3086_v25 }
 0x60f   : > { %2330 = vmatmul.mubr.msk.bf16.vlgmr.msra.gmra.mrb[8].mxu1 %vm768_vm2, %v938_v8  ;;  %v1236_v47 = vpack.c.bf16 %v1229_v44, %v1228_v45 }
 0x610   : > { %2333 = vmatprep.mubr.msk.bf16.mxu1 %vm768_vm2, %v939_v18  ;;  %2348 = vmatpush3.bf16.msra.mxu1 %v1241_v39 }
 0x611   : > { %2360 = vmatpush3.bf16.msra.mxu0 %v2592_v26 }
 0x612   : > { %2361 = vmatprep.subr.bf16.mxu0 %v3086_v25 }
 0x613   : > { %v2722_v48 = vpop.eup %2721 }
 0x614   : > { %v2724_v50 = vpop.eup %2723  ;;  %v1233_v10 = vmul.f32 %v2722_v48, %v3663_v58 }
 0x615   : > { %v2726_v34 = vpop.eup %2725  ;;  %v1230_v37 = vmul.f32 %v2724_v50, %v3637_v49  ;;  %2362 = vmatpush3.bf16.msra.mxu0 %v2593_v1 }
 0x616   : > { %v1232_v51 = vmul.f32 %v2726_v34, %v3655_v54  ;;  %v2728_v52 = vpop.eup %2727  ;;  %2363 = vmatprep.subr.bf16.mxu0 %v3086_v25 }
 0x617   : > { %2334 = vmatmul.mubr.msk.bf16.gmra.mrb[12].mxu1 %vm768_vm2, %v940_v46  ;;  %v1237_v30 = vpack.c.bf16 %v1231_v9, %v1230_v37  ;;  %v2730_v57 = vpop.eup %2729  ;;  %v1235_v59 = vmul.f32 %v2728_v52, %v3659_v56 }
 0x618   : > { %2349 = vmatprep.mubr.msk.bf16.mxu1 %vm768_vm2, %v1236_v47  ;;  %v1238_v55 = vpack.c.bf16 %v1233_v10, %v1232_v51  ;;  %v1234_v60 = vmul.f32 %v2730_v57, %v3653_v53 }
 0x619   : > { %2364 = vmatpush3.bf16.msra.mxu0 %v2594_v4 }
 0x61a   : > { %v1239_v61 = vpack.c.bf16 %v1235_v59, %v1234_v60  ;;  %2365 = vmatprep.subr.bf16.mxu0 %v3086_v25 }
 0x61d   : > { %2366 = vmatpush3.bf16.msra.mxu0 %v2595_v27 }
 0x61e   : > { %2367 = vmatprep.subr.bf16.mxu0 %v3086_v25 }
 0x61f   : > { %2350 = vmatmul.mubr.msk.bf16.vlgmr.msra.gmra.mrb[16].mxu1 %vm768_vm2, %v1237_v30 }
 0x620   : > { %2353 = vmatprep.mubr.msk.bf16.mxu1 %vm768_vm2, %v1238_v55 }
 0x621   : > { %2368 = vmatpush3.bf16.msra.mxu0 %v2596_v29 }
 0x622   : > { %2369 = vmatprep.subr.bf16.mxu0 %v3086_v25 }
 0x625   : > { %2370 = vmatpush3.bf16.msra.mxu0 %v2597_v6  ;;  %v2619_v6 = vld [vmem:[#allocation10 + $0x64] ss:$16 sps:$4 sm:$0xff]  }
 0x626   : > { %2371 = vmatprep.subr.bf16.mxu0 %v3086_v25  ;;  %v2752_v25 = vld [vmem:[%s3438_s30 + $0x8] sm:$0xff] }
 0x627   : > { %2354 = vmatmul.mubr.msk.bf16.gmra.mrb[20].mxu1 %vm768_vm2, %v1239_v61 }
 0x628   : > { %1726 = vmatprep.mubr.bf16.mxu1 %v3077_v17 }
 0x629   : > { %2372 = vmatpush3.bf16.msra.mxu0 %v2598_v31  ;;  %v2617_v31 = vld [vmem:[#allocation10 + $0x60] ss:$16 sps:$4 sm:$0xff]  }
 0x6e2   : > { %v2331_v49 = vpop.f32.mrb[8].mxu1 }
 0x6e3   : > { %v3698_v35 = vpop.f32.mrb[9].mxu1 }
 0x6e4   : > { %v2332_v54 = vpop.f32.mrb[10].mxu1 }
 0x6e5   : > { %v2547_v58 = vpack.i.bf16 %v2332_v54, %v2331_v49  ;;  %v3700_v62 = vpop.f32.mrb[11].mxu1 }
 0x6ea   : > { %v2335_v63 = vpop.f32.mrb[12].mxu1 }
 0x6eb   : > { %v1007_v41 = vpop.f32.mrb[13].mxu1 }
 0x6ec   : > { %v2336_v0 = vpop.f32.mrb[14].mxu1 }
 0x6ed   : > { %v2557_v43 = vpack.i.bf16 %v2336_v0, %v2335_v63  ;;  %v1010_v3 = vpop.f32.mrb[15].mxu1  ;;  %v2599_v63 = vld [vmem:[#allocation10] ss:$16 sps:$4 sm:$0xff]   ;;  %v2602_v0 = vld [vmem:[#allocation10 + $0x8] ss:$16 sps:$4 sm:$0xff]  }
 0x6ee   : > { %v2552_v56 = vpack.i.bf16 %v1010_v3, %v1007_v41  ;;  %v2601_v41 = vld [vmem:[#allocation10 + $0x4] ss:$16 sps:$4 sm:$0xff]  }
 0x6ef   : > { %v2607_v3 = vld [vmem:[#allocation10 + $0x24] ss:$16 sps:$4 sm:$0xff]   ;;  %1694 = vmatprep.subr.bf16.mxu1 %v2601_v41  ;;  %v2653_v41 = vld [vmem:[#allocation11 + $0x58] sm:$0xff]  }
 0x6f0   : > { %1695 = vmatpush1.bf16.msra.mxu1 %v2599_v63  ;;  %v2652_v63 = vld [vmem:[#allocation11 + $0x10] sm:$0xff]  }
 0x6f1   : > { %1696 = vmatprep.subr.bf16.mxu1 %v2607_v3  ;;  %v2656_v3 = vld [vmem:[#allocation11 + $0x20] sm:$0xff]  }
 0x6f2   : > { %v2351_v5 = vpop.f32.mrb[16].mxu1 }
 0x6f3   : > { %v1289_v53 = vpop.f32.mrb[17].mxu1 }
 0x6f4   : > { %v2352_v7 = vpop.f32.mrb[18].mxu1 }
 0x6f5   : > { %v2532_v8 = vpack.i.bf16 %v2352_v7, %v2351_v5  ;;  %v1292_v11 = vpop.f32.mrb[19].mxu1  ;;  %v2605_v5 = vld [vmem:[#allocation10 + $0x20] ss:$16 sps:$4 sm:$0xff]   ;;  %v2613_v7 = vld [vmem:[#allocation10 + $0x44] ss:$16 sps:$4 sm:$0xff]  }
 0x6f6   : > { %1697 = vmatpush1.bf16.msra.mxu1 %v2605_v5  ;;  %v2658_v5 = vld [vmem:[#allocation11 + $0x28] sm:$0xff]  }
 0x6f7   : > { %2533 = vrot.lane.b32.xlu1 %v2532_v8, %s3085_s2  ;;  %v2616_v8 = vld [vmem:[#allocation10 + $0x4c] ss:$16 sps:$4 sm:$0xff]   ;;  %1698 = vmatprep.subr.bf16.mxu1 %v2613_v7  ;;  %v2660_v7 = vld [vmem:[#allocation11 + $0x30] sm:$0xff]  }
 0x6fa   : > { %v2355_v13 = vpop.f32.mrb[20].mxu1 }
 0x6fb   : > { %v1305_v15 = vpop.f32.mrb[21].mxu1 }
 0x6fc   : > { %v2356_v16 = vpop.f32.mrb[22].mxu1 }
 0x6fd   : > { %v2542_v19 = vpack.i.bf16 %v2356_v16, %v2355_v13  ;;  %v1308_v20 = vpop.f32.mrb[23].mxu1  ;;  %v2751_v16 = vld [vmem:[%s3438_s30] sm:$0xff] }
 0x6fe   : > { %v2537_v28 = vpack.i.bf16 %v1308_v20, %v1305_v15  ;;  %v2205_v15 = vld [vmem:[#allocation8] ss:$0 sm:$0xff] }
 0x6ff   : > { %2543 = vrot.lane.b32.xlu1 %v2542_v19, %s3087_s21 }
 0x700   : > { %2538 = vrot.lane.b32.xlu0 %v2537_v28, %s3088_s25 }
 0x703   : > { %2553 = vrot.lane.b32.xlu1 %v2552_v56, %s3088_s25  ;;  %v2610_v56 = vld [vmem:[#allocation10 + $0x2c] ss:$16 sps:$4 sm:$0xff]  }
 0x704   : > { %2548 = vrot.lane.b32.xlu0 %v2547_v58, %s3085_s2 }
 0x708   : > { %2558 = vrot.lane.b32.xlu0 %v2557_v43, %s3087_s21  ;;  %v2604_v43 = vld [vmem:[#allocation10 + $0xc] ss:$16 sps:$4 sm:$0xff]   ;;  %s3090_s21 = smov [#allocation16]  }
 0x709   : > { %1737 = vmatprep.subr.bf16.mxu0 %v2604_v43  ;;  %v2655_v43 = vld [vmem:[#allocation11 + $0x60] sm:$0xff]   ;;  %s2983_s25 = sshll.u32 %s3090_s21, 4  ;;  %s2984_s25 = int_to_ptr.vmem [resolvable:$false] %s2983_s25 }
 0x70a   : > { %s2985_s30 = scalar_lea.vmem %s2984_s25, 512  ;;  %p2986_p13 = scmp.lt.s32.totalorder %s3737_s24, %s2984_s25 }
 0x70b   : > { %p2987_p8 = scmp.lt.s32.totalorder %s2985_s30, %s2979_s23 }
 0x70d   : > { %p2988_p6 = por %p2987_p8, %p2986_p13 }
 0x70f   : > { %p2989_p9 = pnand %p2988_p6, %p2982_p12 }
 0x769   : > { %v2534_v2 = vpop.permute.xlu1 %2533 }
 0x76a   : > { %v2536_v32 = vunpack.i.h.bf16 %v2534_v2  ;;  %v2535_v33 = vunpack.i.l.bf16 %v2534_v2  ;;  %v2622_v2 = vld [vmem:[#allocation10 + $0x6c] ss:$16 sps:$4 sm:$0xff]  }
 0x76c   : > { %v1344_v42 = vsel %vm768_vm2, %v1289_v53, %v2535_v33  ;;  %v1345_v18 = vsel %vm768_vm2, %v1292_v11, %v2536_v32  ;;  %v2608_v53 = vld [vmem:[#allocation10 + $0x28] ss:$16 sps:$4 sm:$0xff]   ;;  %v2625_v33 = vld [vmem:[#allocation10 + $0x84] ss:$16 sps:$4 sm:$0xff]  }
 0x76d   : > { %v2614_v11 = vld [vmem:[#allocation10 + $0x48] ss:$16 sps:$4 sm:$0xff]  }
 0x76e   : > { %v2620_v32 = vld [vmem:[#allocation10 + $0x68] ss:$16 sps:$4 sm:$0xff]  }
 0x771   : > { %v2544_v36 = vpop.permute.xlu1 %2543 }
 0x772   : > { %v2539_v38 = vpop.permute.xlu0 %2538  ;;  %v2546_v22 = vunpack.i.h.bf16 %v2544_v36  ;;  %v2545_v12 = vunpack.i.l.bf16 %v2544_v36  ;;  %v2628_v36 = vld [vmem:[#allocation10 + $0x8c] ss:$16 sps:$4 sm:$0xff]  }
 0x773   : > { %v2541_v39 = vunpack.i.h.bf16 %v2539_v38  ;;  %v2540_v40 = vunpack.i.l.bf16 %v2539_v38  ;;  %v2623_v38 = vld [vmem:[#allocation10 + $0x80] ss:$16 sps:$4 sm:$0xff]  }
 0x775   : > { %v1347_v14 = vsel %vm1048_vm6, %v1345_v18, %v2541_v39  ;;  %v1346_v21 = vsel %vm1048_vm6, %v1344_v42, %v2540_v40  ;;  %v2554_v44 = vpop.permute.xlu1 %2553  ;;  %v2626_v39 = vld [vmem:[#allocation10 + $0x88] ss:$16 sps:$4 sm:$0xff]   ;;  %v2631_v40 = vld [vmem:[#allocation10 + $0xa4] ss:$16 sps:$4 sm:$0xff]   ;;  %v2634_v42 = vld [vmem:[#allocation10 + $0xac] ss:$16 sps:$4 sm:$0xff]  }
 0x776   : > { %v2549_v45 = vpop.permute.xlu0 %2548  ;;  %v1348_v46 = vsel %vm1051_vm7, %v1346_v21, %v2545_v12  ;;  %v1349_v24 = vsel %vm1051_vm7, %v1347_v14, %v2546_v22  ;;  %v2556_v34 = vunpack.i.h.bf16 %v2554_v44  ;;  %v2555_v9 = vunpack.i.l.bf16 %v2554_v44  ;;  %v2629_v18 = vld [vmem:[#allocation10 + $0xa0] ss:$16 sps:$4 sm:$0xff]   ;;  %v2632_v22 = vld [vmem:[#allocation10 + $0xa8] ss:$16 sps:$4 sm:$0xff]   ;;  %v2637_v12 = vld [vmem:[#allocation10 + $0xc4] ss:$16 sps:$4 sm:$0xff]  }
 0x777   : > { %v2551_v47 = vunpack.i.h.bf16 %v2549_v45  ;;  %v2550_v48 = vunpack.i.l.bf16 %v2549_v45  ;;  %v2562_v50 = vpack.i.bf16 %v1349_v24, %v1348_v46  ;;  %v2640_v14 = vld [vmem:[#allocation10 + $0xcc] ss:$16 sps:$4 sm:$0xff]   ;;  %v2635_v21 = vld [vmem:[#allocation10 + $0xc0] ss:$16 sps:$4 sm:$0xff]   ;;  %v2638_v44 = vld [vmem:[#allocation10 + $0xc8] ss:$16 sps:$4 sm:$0xff]  }
 0x778   : > { %v2641_v45 = vld [vmem:[#allocation10 + $0xe0] ss:$16 sps:$4 sm:$0xff]   ;;  %v2643_v46 = vld [vmem:[#allocation10 + $0xe4] ss:$16 sps:$4 sm:$0xff]   ;;  %v2644_v24 = vld [vmem:[#allocation10 + $0xe8] ss:$16 sps:$4 sm:$0xff]  }
 0x779   : > { %v1047_v10 = vsel %vm768_vm2, %v3700_v62, %v2551_v47  ;;  %v1046_v37 = vsel %vm768_vm2, %v3698_v35, %v2550_v48  ;;  %2563 = vrot.lane.b32.xlu1 %v2562_v50, %s3083_s22  ;;  %v2646_v47 = vld [vmem:[#allocation10 + $0xec] ss:$16 sps:$4 sm:$0xff]   ;;  %s3834_s22 = sld [smem:[#allocation27_spill]] }
 0x77a   : > { %v2559_v51 = vpop.permute.xlu0 %2558  ;;  %v1049_v30 = vsel %vm1048_vm6, %v1046_v37, %v2555_v9  ;;  %v1050_v52 = vsel %vm1048_vm6, %v1047_v10, %v2556_v34 }
 0x77b   : > { %v2561_v55 = vunpack.i.h.bf16 %v2559_v51  ;;  %v2560_v57 = vunpack.i.l.bf16 %v2559_v51 }
 0x77d   : > { %v1052_v59 = vsel %vm1051_vm7, %v1049_v30, %v2560_v57  ;;  %v1053_v60 = vsel %vm1051_vm7, %v1050_v52, %v2561_v55  ;;  %v2206_v55 = vld [vmem:[%s3833_s15] ss:$0 sm:$0xff] }
 0x77f   : > { %s3742_s2 = scalar_lea.hbm %s3834_s22, %s2265_s29 }
 0x7eb   : > { %v2564_v61 = vpop.permute.xlu1 %2563 }
 0x7ec   : > { %v2566_v49 = vunpack.i.h.bf16 %v2564_v61  ;;  %v2565_v54 = vunpack.i.l.bf16 %v2564_v61 }
 0x7ee   : > { %v1360_v58 = vsel %vm1358_vm8, %v1053_v60, %v2566_v49  ;;  %v1359_v62 = vsel %vm1358_vm8, %v1052_v59, %v2565_v54  ;;  %v2647_v49 = vld [vmem:[#allocation11 + $0x40] sm:$0xff]  }
 0x7ef   : > { %v1361_v35 = vpack.c.bf16 %v1360_v58, %v1359_v62  ;;  %v2648_v54 = vld [vmem:[#allocation11] sm:$0xff]   ;;  %v2649_v58 = vld [vmem:[#allocation11 + $0x48] sm:$0xff]  }
 0x7f0   : > { %v2650_v62 = vld [vmem:[#allocation11 + $0x8] sm:$0xff]  }
 0x7f1   : > { %2374 = vmatmul.mubr.bf16.vlgmr.msra.gmra.mrb[12].mxu0 %v1361_v35  ;;  %v2651_v35 = vld [vmem:[#allocation11 + $0x50] sm:$0xff]  }
 0x7f2   : > { %1769 = vmatprep.mubr.bf16.mxu0 %v3077_v17  ;;  %1738 = vmatpush1.bf16.msra.mxu0 %v2602_v0  ;;  %v2611_v17 = vld [vmem:[#allocation10 + $0x40] ss:$16 sps:$4 sm:$0xff]   ;;  %v2654_v0 = vld [vmem:[#allocation11 + $0x18] sm:$0xff]  }
 0x7f3   : > { %1739 = vmatprep.subr.bf16.mxu0 %v2610_v56  ;;  %1699 = vmatpush1.bf16.msra.mxu1 %v2611_v17  ;;  %v2657_v56 = vld [vmem:[#allocation11 + $0x68] sm:$0xff]   ;;  %v2662_v17 = vld [vmem:[#allocation11 + $0x38] sm:$0xff]  }
 0x7f4   : > { %1700 = vmatprep.subr.bf16.mxu1 %v2619_v6 }
 0x7f6   : > { %1740 = vmatpush1.bf16.msra.mxu0 %v2608_v53  ;;  %v2659_v53 = vld [vmem:[#allocation11 + $0x70] sm:$0xff]  }
 0x7f7   : > { %1741 = vmatprep.subr.bf16.mxu0 %v2616_v8  ;;  %1701 = vmatpush1.bf16.msra.mxu1 %v2617_v31  ;;  %v2661_v8 = vld [vmem:[#allocation11 + $0x78] sm:$0xff]  }
 0x7f8   : > { %1702 = vmatprep.subr.bf16.mxu1 %v2625_v33 }
 0x7fa   : > { %1742 = vmatpush1.bf16.msra.mxu0 %v2614_v11 }
 0x7fb   : > { %1743 = vmatprep.subr.bf16.mxu0 %v2622_v2  ;;  %1703 = vmatpush1.bf16.msra.mxu1 %v2623_v38 }
 0x7fc   : > { %1704 = vmatprep.subr.bf16.mxu1 %v2631_v40 }
 0x7fe   : > { %1744 = vmatpush1.bf16.msra.mxu0 %v2620_v32 }
 0x7ff   : > { %1745 = vmatprep.subr.bf16.mxu0 %v2628_v36  ;;  %1705 = vmatpush1.bf16.msra.mxu1 %v2629_v18 }
 0x800   : > { %1706 = vmatprep.subr.bf16.mxu1 %v2637_v12 }
 0x802   : > { %1746 = vmatpush1.bf16.msra.mxu0 %v2626_v39 }
 0x803   : > { %1747 = vmatprep.subr.bf16.mxu0 %v2634_v42  ;;  %1707 = vmatpush1.bf16.msra.mxu1 %v2635_v21 }
 0x804   : > { %1708 = vmatprep.subr.bf16.mxu1 %v2643_v46 }
 0x806   : > { %1748 = vmatpush1.bf16.msra.mxu0 %v2632_v22 }
 0x807   : > { %1749 = vmatprep.subr.bf16.mxu0 %v2640_v14  ;;  %1709 = vmatpush1.bf16.msra.mxu1 %v2641_v45 }
 0x808   : > { %2295 = vmatprep.subr.bf16.mxu1 %v2647_v49 }
 0x80a   : > { %1750 = vmatpush1.bf16.msra.mxu0 %v2638_v44 }
 0x80b   : > { %1751 = vmatprep.subr.bf16.mxu0 %v2646_v47 }
 0x80e   : > { %1752 = vmatpush1.bf16.msra.mxu0 %v2644_v24 }
 0x8c4   : > { %v1460_v13 = vpop.f32.mrb[12].mxu0 }
 0x8c5   : > { %v1467_v19 = vadd.f32 %v2751_v16, %v1460_v13  ;;  %v2375_v20 = vpop.f32.mrb[13].mxu0 }
 0x8c6   : > { %v1463_v23 = vpop.f32.mrb[14].mxu0 }
 0x8c7   : > { %v3719_v28 = vadd.f32 %v2205_v15, %v1467_v19  ;;  %v1468_v26 = vadd.f32 %v2752_v25, %v1463_v23  ;;  %v2376_v1 = vpop.f32.mrb[15].mxu0 }
 0x8c9   : > { %v3722_v4 = vadd.f32 %v2205_v15, %v1468_v26  ;;  %v1478_v27 = vmul.f32 %v3719_v28, %v3719_v28 }
 0x8cb   : > { %1480 = vadd.xlane.f32.xlu0 %v1478_v27  ;;  %v1479_v29 = vmul.f32 %v3722_v4, %v3722_v4 }
 0x8cd   : > { %1482 = vadd.xlane.f32.xlu1 %v1479_v29 }
 0x958   : > { %v1481_v48 = vpop.xlane.xlu0 %1480 }
 0x959   : > { %v1484_v50 = vmul.f32 0.0078125, %v1481_v48 }
 0x95a   : > { %v1483_v34 = vpop.xlane.xlu1 %1482 }
 0x95b   : > { %v1486_v9 = vadd.f32 1e-06, %v1484_v50  ;;  %v1485_v10 = vmul.f32 0.0078125, %v1483_v34 }
 0x95d   : > { %2731 = vrsqrt.f32 %v1486_v9  ;;  %v1487_v37 = vadd.f32 1e-06, %v1485_v10 }
 0x95f   : > { %2733 = vrsqrt.f32 %v1487_v37 }
 0x967   : > { %v2732_v51 = vpop.eup %2731 }
 0x968   : > { %v1490_v30 = vmul.f32 %v2732_v51, %v3719_v28 }
 0x969   : > { %v2734_v52 = vpop.eup %2733 }
 0x96a   : > { %v1491_v57 = vmul.f32 %v2734_v52, %v3722_v4  ;;  %v1499_v59 = vmul.f32 %v2206_v55, %v1490_v30 }
 0x96c   : > { %v1500_v60 = vmul.f32 %v2206_v55, %v1491_v57 }
 0x96e   : > { %v1501_v61 = vpack.c.bf16 %v1500_v60, %v1499_v59 }
 0x970   : > { %1727 = vmatmul.mubr.bf16.vlgmr.msra.gmra.mrb[24].mxu1 %v1501_v61  ;;  %1770 = vmatmul.mubr.bf16.vlgmr.msra.gmra.mrb[16].mxu0 %v1501_v61 }
 0x971   : > { %2296 = vmatpush3.bf16.msra.mxu1 %v2648_v54 }
 0x972   : > { %2297 = vmatprep.subr.bf16.mxu1 %v2649_v58 }
 0x975   : > { %2298 = vmatpush3.bf16.msra.mxu1 %v2650_v62 }
 0x976   : > { %2299 = vmatprep.subr.bf16.mxu1 %v2651_v35 }
 0x979   : > { %2300 = vmatpush3.bf16.msra.mxu1 %v2652_v63 }
 0x97a   : > { %2301 = vmatprep.subr.bf16.mxu1 %v2653_v41 }
 0x97d   : > { %2302 = vmatpush3.bf16.msra.mxu1 %v2654_v0 }
 0x97e   : > { %2303 = vmatprep.subr.bf16.mxu1 %v2655_v43 }
 0x981   : > { %2304 = vmatpush3.bf16.msra.mxu1 %v2656_v3 }
 0x982   : > { %2305 = vmatprep.subr.bf16.mxu1 %v2657_v56 }
 0x985   : > { %2306 = vmatpush3.bf16.msra.mxu1 %v2658_v5 }
 0x986   : > { %2307 = vmatprep.subr.bf16.mxu1 %v2659_v53 }
 0x989   : > { %2308 = vmatpush3.bf16.msra.mxu1 %v2660_v7 }
 0x98a   : > { %2309 = vmatprep.subr.bf16.mxu1 %v2661_v8 }
 0x98d   : > { %2310 = vmatpush3.bf16.msra.mxu1 %v2662_v17 }
 0xa43   : > { %v1728_v11 = vpop.f32.mrb[24].mxu1  ;;  %v1771_v13 = vpop.f32.mrb[16].mxu0 }
 0xa44   : > { %v2239_v15 = vmul.f32 -1.442695, %v1771_v13  ;;  %v1730_v16 = vpop.f32.mrb[25].mxu1  ;;  %v1773_v19 = vpop.f32.mrb[17].mxu0 }
 0xa45   : > { %v2240_v20 = vmul.f32 -1.442695, %v1773_v19  ;;  %v1732_v23 = vpop.f32.mrb[26].mxu1  ;;  %v1775_v25 = vpop.f32.mrb[18].mxu0 }
 0xa46   : > { %2735 = vpow2.f32 %v2239_v15  ;;  %v2241_v26 = vmul.f32 -1.442695, %v1775_v25  ;;  %v1734_v1 = vpop.f32.mrb[27].mxu1  ;;  %v1777_v27 = vpop.f32.mrb[19].mxu0 }
 0xa47   : > { %2737 = vpow2.f32 %v2240_v20  ;;  %v2242_v29 = vmul.f32 -1.442695, %v1777_v27 }
 0xa48   : > { %2739 = vpow2.f32 %v2241_v26 }
 0xa49   : > { %2741 = vpow2.f32 %v2242_v29 }
 0xa50   : > { %v2736_v6 = vpop.eup %2735 }
 0xa51   : > { %v2738_v2 = vpop.eup %2737  ;;  %v1792_v31 = vadd.f32 1.0, %v2736_v6 }
 0xa52   : > { %v2740_v32 = vpop.eup %2739  ;;  %v1793_v33 = vadd.f32 1.0, %v2738_v2 }
 0xa53   : > { %v2742_v36 = vpop.eup %2741  ;;  %2743 = vrcp.f32 %v1792_v31  ;;  %v1794_v38 = vadd.f32 1.0, %v2740_v32 }
 0xa54   : > { %2745 = vrcp.f32 %v1793_v33  ;;  %v1795_v39 = vadd.f32 1.0, %v2742_v36 }
 0xa55   : > { %2747 = vrcp.f32 %v1794_v38 }
 0xa56   : > { %2749 = vrcp.f32 %v1795_v39 }
 0xa5d   : > { %v2744_v40 = vpop.eup %2743 }
 0xa5e   : > { %v2746_v42 = vpop.eup %2745  ;;  %v1804_v18 = vmul.f32 %v2744_v40, %v1771_v13 }
 0xa5f   : > { %v2748_v22 = vpop.eup %2747  ;;  %v1805_v12 = vmul.f32 %v2746_v42, %v1773_v19 }
 0xa60   : > { %v2750_v14 = vpop.eup %2749  ;;  %v1808_v21 = vmul.f32 %v1804_v18, %v1728_v11  ;;  %v1806_v44 = vmul.f32 %v2748_v22, %v1775_v25 }
 0xa61   : > { %v1809_v45 = vmul.f32 %v1805_v12, %v1730_v16  ;;  %v1807_v46 = vmul.f32 %v2750_v14, %v1777_v27 }
 0xa62   : > { %v1810_v24 = vmul.f32 %v1806_v44, %v1732_v23 }
 0xa63   : > { %v1811_v47 = vmul.f32 %v1807_v46, %v1734_v1 }
 0xa64   : > { %v1812_v48 = vpack.c.bf16 %v1810_v24, %v1808_v21 }
 0xa65   : > { %v1813_v50 = vpack.c.bf16 %v1811_v47, %v1809_v45 }
 0xa67   : > { %1974 = vmatprep.mubr.bf16.mxu1 %v1813_v50 }
 0xa68   : > { %1975 = vmatmul.mubr.bf16.vlgmr.msra.gmra.mrb[28].mxu1 %v1812_v48 }
 0xb3b   : > { %v2311_v34 = vpop.f32.mrb[28].mxu1 }
 0xb3c   : > { %v2312_v9 = vpop.f32.mrb[29].mxu1 }
 0xb3d   : > { %v2313_v10 = vadd.f32 %v2312_v9, %v2311_v34  ;;  %v2314_v37 = vpop.f32.mrb[30].mxu1 }
 0xb3e   : > { %v2315_v51 = vpop.f32.mrb[31].mxu1 }
 0xb3f   : > { %v1983_v30 = vadd.f32 %v2313_v10, %v3719_v28  ;;  %v2316_v52 = vadd.f32 %v2315_v51, %v2314_v37 }
 0xb41   : > { %1985 = vst [vmem:[%s504_s8] sm:$0xff] %v1983_v30  ;;  %v1984_v55 = vadd.f32 %v2316_v52, %v3722_v4 }
 0xb43   : > { %1986 = vst [vmem:[%s504_s8 + $0x8] sm:$0xff] %v1984_v55 }
 0xb44   : > { %2992 = shalt.err (!%p2989_p9)
}
 0xb45   : > { %s2993_s27 = scalar_lea.hbm %s3742_s2, 256  ;;  %s2997_s29 = scalar_lea.hbm %s3834_s22, 512 }
 0xb46   : > { %p2994_p4 = scmp.ne.s32.totalorder %s3742_s2, %s2993_s27  ;;  %p2998_p5 = scmp.lt.u32.totalorder %s3742_s2, %s3834_s22 }
 0xb47   : > { %p2999_p2 = scmp.lt.u32.totalorder %s2997_s29, %s2993_s27  ;;  %p3001_p10 = scmp.lt.u32.totalorder %s2993_s27, %s3742_s2 }
 0xb48   : > { %p2995_p3 = pnand %p2994_p4, %p3835_p1 }
 0xb49   : > { %p3000_p7 = por %p2999_p2, %p2998_p5 }
 0xb4a   : > { %p2996_p0 = pneg %p2995_p3 }
 0xb4b   : > { %p3002_p11 = por %p3001_p10, %p3000_p7 }
 0xb4d   : > { %p3003_p12 = pnand %p3002_p11, %p2996_p0 }
 0xb4f   : > { %3006 = shalt.err (!%p3003_p12)
}
 0xb50   : > { %s3091_s23 = smov 128   ;;  %s3092_s21 = smov 8  }
 0xb51   : > { %2409 = dma.vmem_to_hbm [thread:$0]  (%p3835_p1), %s3737_s24, 256, %s3742_s2, %s1988_s5, %s3091_s23, %s3091_s23, %s3092_s21  }
 0xb52 PF: > { %s2016_s25 = sand.u32 1, %s3049_s17   ;;  %p3836_p13 = scmp.ne.s32.totalorder %s3819_s3, 0 }
 0xb53   : > { %p3837_p8 = scmp.ge.s32.totalorder %s3061_s20, 2  ;;  %s2017_s30 = scalar_lea.sflag [#allocation4], %s2016_s25 }
 0xb55   : > { %p2438_p6 = pnand %p3837_p8, %p3836_p13 }
 0xb57   : > { %3044 = dma.done.wait (!%p2438_p6), %s2017_s30, 256  }
 0xb58   : > { %3046 = vsyncadd (!%p2438_p6), %s2017_s30, 4294967040  ;;  %p28_p9 = scmp.ge.s32.totalorder %s3356_s16, 4   ;;  %s3838_s17 = smov %s3053_s18 }
 0xb59   : > { %s3839_s18 = smov %s3057_s19  ;;  %s3840_s19 = smov %s3368_s11 }
 0xb5a   : > { %s3841_s20 = smov %s3356_s16  ;;  %30 = sbr.rel (!%p28_p9) target bundleno = 15 (0xf), region = 137 }
 0xb61   :  { %2022 = vsyncpa [#allocation3], 1 }
 0xb62   :  { %2024 = vsyncpa [#allocation3 + $0x1], 1 }
 0xb63   :  { %2025 = vsyncpa [#allocation6], 1 }
 0xb64   :  { %2026 = vsyncpa [#allocation9], 1 }
 0xb65   :  { %2027 = vsyncpa [#allocation12], 1 }
 0xb66   :  { %2028 = vsyncpa [#allocation15], 1 }
 0xb67   :  { %2029 = vsyncpa [#allocation4], 1 }
 0xb68   :  { %2031 = vsyncpa [#allocation4 + $0x1], 1 }

</bundles_post_ra>
